<compile_context>
chip_gen: v6e
topology: v6e:2x2x1
jax: 0.10.0
libtpu: 0.0.40
codegen_flags: <defaults>
</compile_context>

<pallas_src>
import jax
import jax.numpy as jnp
from jax import lax
from jax.experimental import pallas as pl
from jax.experimental.pallas import tpu as pltpu
import numpy as np

N_LAYERS = 13          # WavLM-base: 12 transformer layers + conv features = 13
FRAME = 320            # WavLM total conv downsampling factor
HIDDEN = 768           # real WavLM-base hidden size (lane-dense: 6 x 128)
LN_EPS = 1e-5          # torch.nn.functional.layer_norm default


# ----------------------------------------------------------------------------
# Pallas kernel: streamed per-layer layer_norm over H + weighted accumulation.
# Single-pass moments, layer weight folded into the normalization scale.
# ----------------------------------------------------------------------------
def _make_kernel(h):
    inv_h = 1.0 / float(h)

    def kernel(w_ref, f_ref, o_ref):
        # w_ref: SMEM (13,) f32                 -- softmax(self.weights)
        # f_ref: VMEM (1, 13, TILE_T, H) bf16   -- hidden states, one (b,t)-tile
        # o_ref: VMEM (1, TILE_T, H) out_dtype
        def layer_term(n):
            fl = f_ref[0, n].astype(jnp.float32)                 # one upcast read
            # pass 1: both reductions from the same live f32 values
            s1 = jnp.sum(fl, axis=-1, keepdims=True)
            s2 = jnp.sum(fl * fl, axis=-1, keepdims=True)
            mean = s1 * inv_h
            var = jnp.maximum(s2 * inv_h - mean * mean, 0.0)     # one-pass moments
            # layer weight folded into the LN scale; rsqrt -> EUP (free slot)
            scale = w_ref[n] * lax.rsqrt(var + LN_EPS)
            # pass 2: normalize + weight in a single fused elementwise pass
            return (fl - mean) * scale

        acc = layer_term(0)                        # init with n=0 term (no zero+add)
        for n in range(1, N_LAYERS):               # static unroll: scheduler can
            acc = acc + layer_term(n)              # interleave XLU/EUP/VPU per layer
        o_ref[0] = acc.astype(o_ref.dtype)

    return kernel


# ----------------------------------------------------------------------------
# Generation-aware sizing helpers.
# ----------------------------------------------------------------------------
def _tpu_vmem_bytes():
    try:
        return int(pltpu.get_tpu_info().vmem_capacity_bytes)
    except Exception:
        return 64 * 1024 * 1024                    # conservative (v7x per-TC)


def _round_up(x, m):
    return ((x + m - 1) // m) * m


def _pick_tile_t(t, h, in_itemsize, out_itemsize, vmem_limit, n_in_buf, min_grid_t):
    """Largest sublane-aligned T tile whose pipelined working set fits VMEM.

    Per tile-row bytes counted: n_in_buf pipelined bf16 input slabs (13 layers),
    2 output buffers, and ~4 live f32 temporaries from the unrolled LN
    (accumulator + per-layer cast/centered values).
    """
    budget = (vmem_limit * 5) // 8                 # headroom below vmem_limit
    per_row = h * (n_in_buf * N_LAYERS * in_itemsize + 2 * out_itemsize + 4 * 4)
    t_cap = _round_up(max(t, 8), 8)                # never tile coarser than needed
    for cand in (1024, 512, 256, 128, 64, 32, 16, 8):
        if cand > t_cap:
            continue
        if cand * per_row > budget:
            continue
        if cand > 8 and pl.cdiv(t, cand) < min_grid_t:
            continue                               # keep >=min_grid_t T-blocks
        return cand
    return 8


def _feats_spec(tile_t, h, extra_buffering):
    shape = (1, N_LAYERS, tile_t, h)
    idx = lambda i, j: (i, 0, j, 0)
    if extra_buffering and hasattr(pl, "Buffered"):
        try:
            # 3-deep pipelining smooths slab-boundary DMA on 128 MiB-VMEM chips.
            return pl.BlockSpec(shape, idx, pipeline_mode=pl.Buffered(3))
        except TypeError:
            pass
    return pl.BlockSpec(shape, idx)


# ----------------------------------------------------------------------------
# Wrapper.
# ----------------------------------------------------------------------------
def wavlm_weighted_sum(weights, feats, tile_t=None, out_dtype=jnp.bfloat16):
    """weights: (13,) raw learnable weights; feats: (B, 13, T, H) hidden states."""
    b, n, t, h = feats.shape
    assert n == N_LAYERS

    vmem_cap = _tpu_vmem_bytes()
    # v7x: 64 MiB/TC is the entire VMEM -> cap the request at 3/4 physical.
    vmem_limit = min(64 * 1024 * 1024, (vmem_cap * 3) // 4)
    big_vmem = vmem_cap >= 100 * 1024 * 1024       # v5e / v6e (128 MiB)
    n_in_buf = 3 if big_vmem else 2

    in_itemsize = jnp.dtype(feats.dtype).itemsize
    out_itemsize = jnp.dtype(out_dtype).itemsize

    if tile_t is None:
        # >=2 grid points overall so both v7x TensorCores get work when B == 1.
        min_grid_t = 2 if b < 2 else 1
        tile_t = _pick_tile_t(t, h, in_itemsize, out_itemsize,
                              vmem_limit, n_in_buf, min_grid_t)
    assert tile_t % 8 == 0

    grid_t = pl.cdiv(t, tile_t)
    t_pad = grid_t * tile_t
    if t_pad != t:
        # Zero-pad the ragged tail tile; LN of an all-zero row is 0, and the
        # padded rows are sliced off below.
        feats = jnp.pad(feats, ((0, 0), (0, 0), (0, t_pad - t), (0, 0)))

    w_soft = jax.nn.softmax(weights.astype(jnp.float32), axis=-1)   # tiny glue op

    out = pl.pallas_call(
        _make_kernel(h),
        out_shape=jax.ShapeDtypeStruct((b, t_pad, h), out_dtype),
        grid=(b, grid_t),
        in_specs=[
            pl.BlockSpec(memory_space=pltpu.SMEM),                   # 13 weights
            _feats_spec(tile_t, h,
                        extra_buffering=big_vmem and tile_t >= 256),  # bf16 feats
        ],
        out_specs=pl.BlockSpec((1, tile_t, h), lambda i, j: (i, j, 0)),
        compiler_params=pltpu.CompilerParams(
            dimension_semantics=("parallel", "parallel"),
            vmem_limit_bytes=vmem_limit),
    )(w_soft, feats)

    if t_pad != t:
        out = out[:, :t, :]
    return out


# ----------------------------------------------------------------------------
# Deterministic synthetic stand-in for the pretrained WavLM extractor.
# Emits bf16 hidden states in batch-major (B, 13, T, H) layout.
# ----------------------------------------------------------------------------
def synthetic_extractor(waves, layer_mats):
    b, l = waves.shape
    t = l // FRAME
    frames = waves[:, : t * FRAME].reshape(b, t, FRAME)
    feats = jnp.einsum("btf,nfh->bnth", frames, layer_mats)     # (B, 13, T, H) f32
    return feats.astype(jnp.bfloat16)                           # bf16 in HBM


def reference(weights, feats):
    """Pure-JAX reference matching the PyTorch forward (weighted_sum=True)."""
    f = feats.astype(jnp.float32)
    mean = jnp.mean(f, axis=-1, keepdims=True)
    var = jnp.mean(jnp.square(f - mean), axis=-1, keepdims=True)
    fn = (f - mean) / jnp.sqrt(var + LN_EPS)
    w = jax.nn.softmax(weights.astype(jnp.float32), axis=-1)
    return jnp.einsum("n,bnth->bth", w, fn)


if __name__ == "__main__":
    key = jax.random.PRNGKey(0)
    k_wave, k_proj = jax.random.split(key)

    B = 2
    T = 16
    wave_len = T * FRAME                       # 5120 samples -> 16 frames
    waves = jax.random.normal(k_wave, (B, wave_len), dtype=jnp.float32)

    # Deterministic synthetic "extractor" parameters.
    layer_mats = (jax.random.normal(k_proj, (N_LAYERS, FRAME, HIDDEN),
                                    dtype=jnp.float32) / np.sqrt(FRAME))

    # Module parameter from __init__: nn.Parameter(torch.ones(13) / 13)
    weights = jnp.ones((N_LAYERS,), dtype=jnp.float32) / N_LAYERS

    feats = synthetic_extractor(waves, layer_mats)              # (B, 13, T, H) bf16
    ref = reference(weights, feats)

    # 1) explicit tile_t=8 -> grid (2, 2): multi-block path, bf16 output.
    out = wavlm_weighted_sum(weights, feats, tile_t=8)          # (B, T, H) bf16
    out = jax.block_until_ready(out)
    np.testing.assert_allclose(np.asarray(out, dtype=np.float32), np.asarray(ref),
                               rtol=2e-2, atol=2e-2)

    # 2) ragged T (pad + slice path) with auto tile selection, f32 output.
    T2 = 12
    feats2 = feats[:, :, :T2, :]
    out2 = wavlm_weighted_sum(weights, feats2, out_dtype=jnp.float32)
    out2 = jax.block_until_ready(out2)
    np.testing.assert_allclose(np.asarray(out2),
                               np.asarray(reference(weights, feats2)),
                               rtol=1e-4, atol=1e-4)

    print("KERNEL_OK")
</pallas_src>

<mosaic_0001>
module attributes {stable_mosaic.version = 11 : i64} {
  func.func @kernel(%arg0: i32, %arg1: i32, %arg2: memref<13xf32, #tpu.memory_space<smem>>, %arg3: memref<1x13x8x768xbf16, #tpu.memory_space<vmem>>, %arg4: memref<1x8x768xbf16, #tpu.memory_space<vmem>>) attributes {dimension_semantics = [#tpu.dimension_semantics<parallel>, #tpu.dimension_semantics<parallel>], iteration_bounds = array<i64: 2, 2>, scalar_prefetch = 0 : i64, scratch_operands = 0 : i64, tpu.core_type = #tpu.core_type<tc>, window_params = [{transform_indices = @transform_0, window_bounds = array<i64: 13>}, {transform_indices = @transform_1, window_bounds = array<i64: 1, 13, 8, 768>}, {transform_indices = @transform_2, window_bounds = array<i64: 1, 8, 768>}]} {
    %c0 = arith.constant 0 : index
    %c0_0 = arith.constant 0 : index
    %c0_1 = arith.constant 0 : index
    %c0_2 = arith.constant 0 : index
    %0 = vector.load %arg3[%c0, %c0_0, %c0_1, %c0_2] : memref<1x13x8x768xbf16, #tpu.memory_space<vmem>>, vector<1x1x8x768xbf16>
    %1 = vector.shape_cast %0 : vector<1x1x8x768xbf16> to vector<8x768xbf16>
    %2 = arith.extf %1 : vector<8x768xbf16> to vector<8x768xf32>
    %cst = arith.constant dense<0.000000e+00> : vector<8xf32>
    %3 = vector.multi_reduction <add>, %2, %cst [1] : vector<8x768xf32> to vector<8xf32>
    %4 = vector.shape_cast %3 : vector<8xf32> to vector<8x1xf32>
    %5 = arith.mulf %2, %2 : vector<8x768xf32>
    %cst_3 = arith.constant dense<0.000000e+00> : vector<8xf32>
    %6 = vector.multi_reduction <add>, %5, %cst_3 [1] : vector<8x768xf32> to vector<8xf32>
    %7 = vector.shape_cast %6 : vector<8xf32> to vector<8x1xf32>
    %cst_4 = arith.constant 0.00130208337 : f32
    %8 = vector.broadcast %cst_4 : f32 to vector<8x1xf32>
    %9 = arith.mulf %4, %8 : vector<8x1xf32>
    %cst_5 = arith.constant 0.00130208337 : f32
    %10 = vector.broadcast %cst_5 : f32 to vector<8x1xf32>
    %11 = arith.mulf %7, %10 : vector<8x1xf32>
    %12 = arith.mulf %9, %9 : vector<8x1xf32>
    %13 = arith.subf %11, %12 : vector<8x1xf32>
    %cst_6 = arith.constant 0.000000e+00 : f32
    %14 = vector.broadcast %cst_6 : f32 to vector<8x1xf32>
    %15 = arith.maximumf %13, %14 : vector<8x1xf32>
    %c0_7 = arith.constant 0 : index
    %16 = memref.load %arg2[%c0_7] : memref<13xf32, #tpu.memory_space<smem>>
    %cst_8 = arith.constant 9.99999974E-6 : f32
    %17 = vector.broadcast %cst_8 : f32 to vector<8x1xf32>
    %18 = arith.addf %15, %17 : vector<8x1xf32>
    %19 = math.rsqrt %18 : vector<8x1xf32>
    %20 = vector.broadcast %16 : f32 to vector<8x1xf32>
    %21 = arith.mulf %20, %19 : vector<8x1xf32>
    %22 = vector.broadcast %9 : vector<8x1xf32> to vector<8x768xf32>
    %23 = arith.subf %2, %22 : vector<8x768xf32>
    %24 = vector.broadcast %21 : vector<8x1xf32> to vector<8x768xf32>
    %25 = arith.mulf %23, %24 : vector<8x768xf32>
    %c0_9 = arith.constant 0 : index
    %c1 = arith.constant 1 : index
    %c0_10 = arith.constant 0 : index
    %c0_11 = arith.constant 0 : index
    %26 = vector.load %arg3[%c0_9, %c1, %c0_10, %c0_11] : memref<1x13x8x768xbf16, #tpu.memory_space<vmem>>, vector<1x1x8x768xbf16>
    %27 = vector.shape_cast %26 : vector<1x1x8x768xbf16> to vector<8x768xbf16>
    %28 = arith.extf %27 : vector<8x768xbf16> to vector<8x768xf32>
    %cst_12 = arith.constant dense<0.000000e+00> : vector<8xf32>
    %29 = vector.multi_reduction <add>, %28, %cst_12 [1] : vector<8x768xf32> to vector<8xf32>
    %30 = vector.shape_cast %29 : vector<8xf32> to vector<8x1xf32>
    %31 = arith.mulf %28, %28 : vector<8x768xf32>
    %cst_13 = arith.constant dense<0.000000e+00> : vector<8xf32>
    %32 = vector.multi_reduction <add>, %31, %cst_13 [1] : vector<8x768xf32> to vector<8xf32>
    %33 = vector.shape_cast %32 : vector<8xf32> to vector<8x1xf32>
    %cst_14 = arith.constant 0.00130208337 : f32
    %34 = vector.broadcast %cst_14 : f32 to vector<8x1xf32>
    %35 = arith.mulf %30, %34 : vector<8x1xf32>
    %cst_15 = arith.constant 0.00130208337 : f32
    %36 = vector.broadcast %cst_15 : f32 to vector<8x1xf32>
    %37 = arith.mulf %33, %36 : vector<8x1xf32>
    %38 = arith.mulf %35, %35 : vector<8x1xf32>
    %39 = arith.subf %37, %38 : vector<8x1xf32>
    %cst_16 = arith.constant 0.000000e+00 : f32
    %40 = vector.broadcast %cst_16 : f32 to vector<8x1xf32>
    %41 = arith.maximumf %39, %40 : vector<8x1xf32>
    %c1_17 = arith.constant 1 : index
    %42 = memref.load %arg2[%c1_17] : memref<13xf32, #tpu.memory_space<smem>>
    %cst_18 = arith.constant 9.99999974E-6 : f32
    %43 = vector.broadcast %cst_18 : f32 to vector<8x1xf32>
    %44 = arith.addf %41, %43 : vector<8x1xf32>
    %45 = math.rsqrt %44 : vector<8x1xf32>
    %46 = vector.broadcast %42 : f32 to vector<8x1xf32>
    %47 = arith.mulf %46, %45 : vector<8x1xf32>
    %48 = vector.broadcast %35 : vector<8x1xf32> to vector<8x768xf32>
    %49 = arith.subf %28, %48 : vector<8x768xf32>
    %50 = vector.broadcast %47 : vector<8x1xf32> to vector<8x768xf32>
    %51 = arith.mulf %49, %50 : vector<8x768xf32>
    %52 = arith.addf %25, %51 : vector<8x768xf32>
    %c0_19 = arith.constant 0 : index
    %c2 = arith.constant 2 : index
    %c0_20 = arith.constant 0 : index
    %c0_21 = arith.constant 0 : index
    %53 = vector.load %arg3[%c0_19, %c2, %c0_20, %c0_21] : memref<1x13x8x768xbf16, #tpu.memory_space<vmem>>, vector<1x1x8x768xbf16>
    %54 = vector.shape_cast %53 : vector<1x1x8x768xbf16> to vector<8x768xbf16>
    %55 = arith.extf %54 : vector<8x768xbf16> to vector<8x768xf32>
    %cst_22 = arith.constant dense<0.000000e+00> : vector<8xf32>
    %56 = vector.multi_reduction <add>, %55, %cst_22 [1] : vector<8x768xf32> to vector<8xf32>
    %57 = vector.shape_cast %56 : vector<8xf32> to vector<8x1xf32>
    %58 = arith.mulf %55, %55 : vector<8x768xf32>
    %cst_23 = arith.constant dense<0.000000e+00> : vector<8xf32>
    %59 = vector.multi_reduction <add>, %58, %cst_23 [1] : vector<8x768xf32> to vector<8xf32>
    %60 = vector.shape_cast %59 : vector<8xf32> to vector<8x1xf32>
    %cst_24 = arith.constant 0.00130208337 : f32
    %61 = vector.broadcast %cst_24 : f32 to vector<8x1xf32>
    %62 = arith.mulf %57, %61 : vector<8x1xf32>
    %cst_25 = arith.constant 0.00130208337 : f32
    %63 = vector.broadcast %cst_25 : f32 to vector<8x1xf32>
    %64 = arith.mulf %60, %63 : vector<8x1xf32>
    %65 = arith.mulf %62, %62 : vector<8x1xf32>
    %66 = arith.subf %64, %65 : vector<8x1xf32>
    %cst_26 = arith.constant 0.000000e+00 : f32
    %67 = vector.broadcast %cst_26 : f32 to vector<8x1xf32>
    %68 = arith.maximumf %66, %67 : vector<8x1xf32>
    %c2_27 = arith.constant 2 : index
    %69 = memref.load %arg2[%c2_27] : memref<13xf32, #tpu.memory_space<smem>>
    %cst_28 = arith.constant 9.99999974E-6 : f32
    %70 = vector.broadcast %cst_28 : f32 to vector<8x1xf32>
    %71 = arith.addf %68, %70 : vector<8x1xf32>
    %72 = math.rsqrt %71 : vector<8x1xf32>
    %73 = vector.broadcast %69 : f32 to vector<8x1xf32>
    %74 = arith.mulf %73, %72 : vector<8x1xf32>
    %75 = vector.broadcast %62 : vector<8x1xf32> to vector<8x768xf32>
    %76 = arith.subf %55, %75 : vector<8x768xf32>
    %77 = vector.broadcast %74 : vector<8x1xf32> to vector<8x768xf32>
    %78 = arith.mulf %76, %77 : vector<8x768xf32>
    %79 = arith.addf %52, %78 : vector<8x768xf32>
    %c0_29 = arith.constant 0 : index
    %c3 = arith.constant 3 : index
    %c0_30 = arith.constant 0 : index
    %c0_31 = arith.constant 0 : index
    %80 = vector.load %arg3[%c0_29, %c3, %c0_30, %c0_31] : memref<1x13x8x768xbf16, #tpu.memory_space<vmem>>, vector<1x1x8x768xbf16>
    %81 = vector.shape_cast %80 : vector<1x1x8x768xbf16> to vector<8x768xbf16>
    %82 = arith.extf %81 : vector<8x768xbf16> to vector<8x768xf32>
    %cst_32 = arith.constant dense<0.000000e+00> : vector<8xf32>
    %83 = vector.multi_reduction <add>, %82, %cst_32 [1] : vector<8x768xf32> to vector<8xf32>
    %84 = vector.shape_cast %83 : vector<8xf32> to vector<8x1xf32>
    %85 = arith.mulf %82, %82 : vector<8x768xf32>
    %cst_33 = arith.constant dense<0.000000e+00> : vector<8xf32>
    %86 = vector.multi_reduction <add>, %85, %cst_33 [1] : vector<8x768xf32> to vector<8xf32>
    %87 = vector.shape_cast %86 : vector<8xf32> to vector<8x1xf32>
    %cst_34 = arith.constant 0.00130208337 : f32
    %88 = vector.broadcast %cst_34 : f32 to vector<8x1xf32>
    %89 = arith.mulf %84, %88 : vector<8x1xf32>
    %cst_35 = arith.constant 0.00130208337 : f32
    %90 = vector.broadcast %cst_35 : f32 to vector<8x1xf32>
    %91 = arith.mulf %87, %90 : vector<8x1xf32>
    %92 = arith.mulf %89, %89 : vector<8x1xf32>
    %93 = arith.subf %91, %92 : vector<8x1xf32>
    %cst_36 = arith.constant 0.000000e+00 : f32
    %94 = vector.broadcast %cst_36 : f32 to vector<8x1xf32>
    %95 = arith.maximumf %93, %94 : vector<8x1xf32>
    %c3_37 = arith.constant 3 : index
    %96 = memref.load %arg2[%c3_37] : memref<13xf32, #tpu.memory_space<smem>>
    %cst_38 = arith.constant 9.99999974E-6 : f32
    %97 = vector.broadcast %cst_38 : f32 to vector<8x1xf32>
    %98 = arith.addf %95, %97 : vector<8x1xf32>
    %99 = math.rsqrt %98 : vector<8x1xf32>
    %100 = vector.broadcast %96 : f32 to vector<8x1xf32>
    %101 = arith.mulf %100, %99 : vector<8x1xf32>
    %102 = vector.broadcast %89 : vector<8x1xf32> to vector<8x768xf32>
    %103 = arith.subf %82, %102 : vector<8x768xf32>
    %104 = vector.broadcast %101 : vector<8x1xf32> to vector<8x768xf32>
    %105 = arith.mulf %103, %104 : vector<8x768xf32>
    %106 = arith.addf %79, %105 : vector<8x768xf32>
    %c0_39 = arith.constant 0 : index
    %c4 = arith.constant 4 : index
    %c0_40 = arith.constant 0 : index
    %c0_41 = arith.constant 0 : index
    %107 = vector.load %arg3[%c0_39, %c4, %c0_40, %c0_41] : memref<1x13x8x768xbf16, #tpu.memory_space<vmem>>, vector<1x1x8x768xbf16>
    %108 = vector.shape_cast %107 : vector<1x1x8x768xbf16> to vector<8x768xbf16>
    %109 = arith.extf %108 : vector<8x768xbf16> to vector<8x768xf32>
    %cst_42 = arith.constant dense<0.000000e+00> : vector<8xf32>
    %110 = vector.multi_reduction <add>, %109, %cst_42 [1] : vector<8x768xf32> to vector<8xf32>
    %111 = vector.shape_cast %110 : vector<8xf32> to vector<8x1xf32>
    %112 = arith.mulf %109, %109 : vector<8x768xf32>
    %cst_43 = arith.constant dense<0.000000e+00> : vector<8xf32>
    %113 = vector.multi_reduction <add>, %112, %cst_43 [1] : vector<8x768xf32> to vector<8xf32>
    %114 = vector.shape_cast %113 : vector<8xf32> to vector<8x1xf32>
    %cst_44 = arith.constant 0.00130208337 : f32
    %115 = vector.broadcast %cst_44 : f32 to vector<8x1xf32>
    %116 = arith.mulf %111, %115 : vector<8x1xf32>
    %cst_45 = arith.constant 0.00130208337 : f32
    %117 = vector.broadcast %cst_45 : f32 to vector<8x1xf32>
    %118 = arith.mulf %114, %117 : vector<8x1xf32>
    %119 = arith.mulf %116, %116 : vector<8x1xf32>
    %120 = arith.subf %118, %119 : vector<8x1xf32>
    %cst_46 = arith.constant 0.000000e+00 : f32
    %121 = vector.broadcast %cst_46 : f32 to vector<8x1xf32>
    %122 = arith.maximumf %120, %121 : vector<8x1xf32>
    %c4_47 = arith.constant 4 : index
    %123 = memref.load %arg2[%c4_47] : memref<13xf32, #tpu.memory_space<smem>>
    %cst_48 = arith.constant 9.99999974E-6 : f32
    %124 = vector.broadcast %cst_48 : f32 to vector<8x1xf32>
    %125 = arith.addf %122, %124 : vector<8x1xf32>
    %126 = math.rsqrt %125 : vector<8x1xf32>
    %127 = vector.broadcast %123 : f32 to vector<8x1xf32>
    %128 = arith.mulf %127, %126 : vector<8x1xf32>
    %129 = vector.broadcast %116 : vector<8x1xf32> to vector<8x768xf32>
    %130 = arith.subf %109, %129 : vector<8x768xf32>
    %131 = vector.broadcast %128 : vector<8x1xf32> to vector<8x768xf32>
    %132 = arith.mulf %130, %131 : vector<8x768xf32>
    %133 = arith.addf %106, %132 : vector<8x768xf32>
    %c0_49 = arith.constant 0 : index
    %c5 = arith.constant 5 : index
    %c0_50 = arith.constant 0 : index
    %c0_51 = arith.constant 0 : index
    %134 = vector.load %arg3[%c0_49, %c5, %c0_50, %c0_51] : memref<1x13x8x768xbf16, #tpu.memory_space<vmem>>, vector<1x1x8x768xbf16>
    %135 = vector.shape_cast %134 : vector<1x1x8x768xbf16> to vector<8x768xbf16>
    %136 = arith.extf %135 : vector<8x768xbf16> to vector<8x768xf32>
    %cst_52 = arith.constant dense<0.000000e+00> : vector<8xf32>
    %137 = vector.multi_reduction <add>, %136, %cst_52 [1] : vector<8x768xf32> to vector<8xf32>
    %138 = vector.shape_cast %137 : vector<8xf32> to vector<8x1xf32>
    %139 = arith.mulf %136, %136 : vector<8x768xf32>
    %cst_53 = arith.constant dense<0.000000e+00> : vector<8xf32>
    %140 = vector.multi_reduction <add>, %139, %cst_53 [1] : vector<8x768xf32> to vector<8xf32>
    %141 = vector.shape_cast %140 : vector<8xf32> to vector<8x1xf32>
    %cst_54 = arith.constant 0.00130208337 : f32
    %142 = vector.broadcast %cst_54 : f32 to vector<8x1xf32>
    %143 = arith.mulf %138, %142 : vector<8x1xf32>
    %cst_55 = arith.constant 0.00130208337 : f32
    %144 = vector.broadcast %cst_55 : f32 to vector<8x1xf32>
    %145 = arith.mulf %141, %144 : vector<8x1xf32>
    %146 = arith.mulf %143, %143 : vector<8x1xf32>
    %147 = arith.subf %145, %146 : vector<8x1xf32>
    %cst_56 = arith.constant 0.000000e+00 : f32
    %148 = vector.broadcast %cst_56 : f32 to vector<8x1xf32>
    %149 = arith.maximumf %147, %148 : vector<8x1xf32>
    %c5_57 = arith.constant 5 : index
    %150 = memref.load %arg2[%c5_57] : memref<13xf32, #tpu.memory_space<smem>>
    %cst_58 = arith.constant 9.99999974E-6 : f32
    %151 = vector.broadcast %cst_58 : f32 to vector<8x1xf32>
    %152 = arith.addf %149, %151 : vector<8x1xf32>
    %153 = math.rsqrt %152 : vector<8x1xf32>
    %154 = vector.broadcast %150 : f32 to vector<8x1xf32>
    %155 = arith.mulf %154, %153 : vector<8x1xf32>
    %156 = vector.broadcast %143 : vector<8x1xf32> to vector<8x768xf32>
    %157 = arith.subf %136, %156 : vector<8x768xf32>
    %158 = vector.broadcast %155 : vector<8x1xf32> to vector<8x768xf32>
    %159 = arith.mulf %157, %158 : vector<8x768xf32>
    %160 = arith.addf %133, %159 : vector<8x768xf32>
    %c0_59 = arith.constant 0 : index
    %c6 = arith.constant 6 : index
    %c0_60 = arith.constant 0 : index
    %c0_61 = arith.constant 0 : index
    %161 = vector.load %arg3[%c0_59, %c6, %c0_60, %c0_61] : memref<1x13x8x768xbf16, #tpu.memory_space<vmem>>, vector<1x1x8x768xbf16>
    %162 = vector.shape_cast %161 : vector<1x1x8x768xbf16> to vector<8x768xbf16>
    %163 = arith.extf %162 : vector<8x768xbf16> to vector<8x768xf32>
    %cst_62 = arith.constant dense<0.000000e+00> : vector<8xf32>
    %164 = vector.multi_reduction <add>, %163, %cst_62 [1] : vector<8x768xf32> to vector<8xf32>
    %165 = vector.shape_cast %164 : vector<8xf32> to vector<8x1xf32>
    %166 = arith.mulf %163, %163 : vector<8x768xf32>
    %cst_63 = arith.constant dense<0.000000e+00> : vector<8xf32>
    %167 = vector.multi_reduction <add>, %166, %cst_63 [1] : vector<8x768xf32> to vector<8xf32>
    %168 = vector.shape_cast %167 : vector<8xf32> to vector<8x1xf32>
    %cst_64 = arith.constant 0.00130208337 : f32
    %169 = vector.broadcast %cst_64 : f32 to vector<8x1xf32>
    %170 = arith.mulf %165, %169 : vector<8x1xf32>
    %cst_65 = arith.constant 0.00130208337 : f32
    %171 = vector.broadcast %cst_65 : f32 to vector<8x1xf32>
    %172 = arith.mulf %168, %171 : vector<8x1xf32>
    %173 = arith.mulf %170, %170 : vector<8x1xf32>
    %174 = arith.subf %172, %173 : vector<8x1xf32>
    %cst_66 = arith.constant 0.000000e+00 : f32
    %175 = vector.broadcast %cst_66 : f32 to vector<8x1xf32>
    %176 = arith.maximumf %174, %175 : vector<8x1xf32>
    %c6_67 = arith.constant 6 : index
    %177 = memref.load %arg2[%c6_67] : memref<13xf32, #tpu.memory_space<smem>>
    %cst_68 = arith.constant 9.99999974E-6 : f32
    %178 = vector.broadcast %cst_68 : f32 to vector<8x1xf32>
    %179 = arith.addf %176, %178 : vector<8x1xf32>
    %180 = math.rsqrt %179 : vector<8x1xf32>
    %181 = vector.broadcast %177 : f32 to vector<8x1xf32>
    %182 = arith.mulf %181, %180 : vector<8x1xf32>
    %183 = vector.broadcast %170 : vector<8x1xf32> to vector<8x768xf32>
    %184 = arith.subf %163, %183 : vector<8x768xf32>
    %185 = vector.broadcast %182 : vector<8x1xf32> to vector<8x768xf32>
    %186 = arith.mulf %184, %185 : vector<8x768xf32>
    %187 = arith.addf %160, %186 : vector<8x768xf32>
    %c0_69 = arith.constant 0 : index
    %c7 = arith.constant 7 : index
    %c0_70 = arith.constant 0 : index
    %c0_71 = arith.constant 0 : index
    %188 = vector.load %arg3[%c0_69, %c7, %c0_70, %c0_71] : memref<1x13x8x768xbf16, #tpu.memory_space<vmem>>, vector<1x1x8x768xbf16>
    %189 = vector.shape_cast %188 : vector<1x1x8x768xbf16> to vector<8x768xbf16>
    %190 = arith.extf %189 : vector<8x768xbf16> to vector<8x768xf32>
    %cst_72 = arith.constant dense<0.000000e+00> : vector<8xf32>
    %191 = vector.multi_reduction <add>, %190, %cst_72 [1] : vector<8x768xf32> to vector<8xf32>
    %192 = vector.shape_cast %191 : vector<8xf32> to vector<8x1xf32>
    %193 = arith.mulf %190, %190 : vector<8x768xf32>
    %cst_73 = arith.constant dense<0.000000e+00> : vector<8xf32>
    %194 = vector.multi_reduction <add>, %193, %cst_73 [1] : vector<8x768xf32> to vector<8xf32>
    %195 = vector.shape_cast %194 : vector<8xf32> to vector<8x1xf32>
    %cst_74 = arith.constant 0.00130208337 : f32
    %196 = vector.broadcast %cst_74 : f32 to vector<8x1xf32>
    %197 = arith.mulf %192, %196 : vector<8x1xf32>
    %cst_75 = arith.constant 0.00130208337 : f32
    %198 = vector.broadcast %cst_75 : f32 to vector<8x1xf32>
    %199 = arith.mulf %195, %198 : vector<8x1xf32>
    %200 = arith.mulf %197, %197 : vector<8x1xf32>
    %201 = arith.subf %199, %200 : vector<8x1xf32>
    %cst_76 = arith.constant 0.000000e+00 : f32
    %202 = vector.broadcast %cst_76 : f32 to vector<8x1xf32>
    %203 = arith.maximumf %201, %202 : vector<8x1xf32>
    %c7_77 = arith.constant 7 : index
    %204 = memref.load %arg2[%c7_77] : memref<13xf32, #tpu.memory_space<smem>>
    %cst_78 = arith.constant 9.99999974E-6 : f32
    %205 = vector.broadcast %cst_78 : f32 to vector<8x1xf32>
    %206 = arith.addf %203, %205 : vector<8x1xf32>
    %207 = math.rsqrt %206 : vector<8x1xf32>
    %208 = vector.broadcast %204 : f32 to vector<8x1xf32>
    %209 = arith.mulf %208, %207 : vector<8x1xf32>
    %210 = vector.broadcast %197 : vector<8x1xf32> to vector<8x768xf32>
    %211 = arith.subf %190, %210 : vector<8x768xf32>
    %212 = vector.broadcast %209 : vector<8x1xf32> to vector<8x768xf32>
    %213 = arith.mulf %211, %212 : vector<8x768xf32>
    %214 = arith.addf %187, %213 : vector<8x768xf32>
    %c0_79 = arith.constant 0 : index
    %c8 = arith.constant 8 : index
    %c0_80 = arith.constant 0 : index
    %c0_81 = arith.constant 0 : index
    %215 = vector.load %arg3[%c0_79, %c8, %c0_80, %c0_81] : memref<1x13x8x768xbf16, #tpu.memory_space<vmem>>, vector<1x1x8x768xbf16>
    %216 = vector.shape_cast %215 : vector<1x1x8x768xbf16> to vector<8x768xbf16>
    %217 = arith.extf %216 : vector<8x768xbf16> to vector<8x768xf32>
    %cst_82 = arith.constant dense<0.000000e+00> : vector<8xf32>
    %218 = vector.multi_reduction <add>, %217, %cst_82 [1] : vector<8x768xf32> to vector<8xf32>
    %219 = vector.shape_cast %218 : vector<8xf32> to vector<8x1xf32>
    %220 = arith.mulf %217, %217 : vector<8x768xf32>
    %cst_83 = arith.constant dense<0.000000e+00> : vector<8xf32>
    %221 = vector.multi_reduction <add>, %220, %cst_83 [1] : vector<8x768xf32> to vector<8xf32>
    %222 = vector.shape_cast %221 : vector<8xf32> to vector<8x1xf32>
    %cst_84 = arith.constant 0.00130208337 : f32
    %223 = vector.broadcast %cst_84 : f32 to vector<8x1xf32>
    %224 = arith.mulf %219, %223 : vector<8x1xf32>
    %cst_85 = arith.constant 0.00130208337 : f32
    %225 = vector.broadcast %cst_85 : f32 to vector<8x1xf32>
    %226 = arith.mulf %222, %225 : vector<8x1xf32>
    %227 = arith.mulf %224, %224 : vector<8x1xf32>
    %228 = arith.subf %226, %227 : vector<8x1xf32>
    %cst_86 = arith.constant 0.000000e+00 : f32
    %229 = vector.broadcast %cst_86 : f32 to vector<8x1xf32>
    %230 = arith.maximumf %228, %229 : vector<8x1xf32>
    %c8_87 = arith.constant 8 : index
    %231 = memref.load %arg2[%c8_87] : memref<13xf32, #tpu.memory_space<smem>>
    %cst_88 = arith.constant 9.99999974E-6 : f32
    %232 = vector.broadcast %cst_88 : f32 to vector<8x1xf32>
    %233 = arith.addf %230, %232 : vector<8x1xf32>
    %234 = math.rsqrt %233 : vector<8x1xf32>
    %235 = vector.broadcast %231 : f32 to vector<8x1xf32>
    %236 = arith.mulf %235, %234 : vector<8x1xf32>
    %237 = vector.broadcast %224 : vector<8x1xf32> to vector<8x768xf32>
    %238 = arith.subf %217, %237 : vector<8x768xf32>
    %239 = vector.broadcast %236 : vector<8x1xf32> to vector<8x768xf32>
    %240 = arith.mulf %238, %239 : vector<8x768xf32>
    %241 = arith.addf %214, %240 : vector<8x768xf32>
    %c0_89 = arith.constant 0 : index
    %c9 = arith.constant 9 : index
    %c0_90 = arith.constant 0 : index
    %c0_91 = arith.constant 0 : index
    %242 = vector.load %arg3[%c0_89, %c9, %c0_90, %c0_91] : memref<1x13x8x768xbf16, #tpu.memory_space<vmem>>, vector<1x1x8x768xbf16>
    %243 = vector.shape_cast %242 : vector<1x1x8x768xbf16> to vector<8x768xbf16>
    %244 = arith.extf %243 : vector<8x768xbf16> to vector<8x768xf32>
    %cst_92 = arith.constant dense<0.000000e+00> : vector<8xf32>
    %245 = vector.multi_reduction <add>, %244, %cst_92 [1] : vector<8x768xf32> to vector<8xf32>
    %246 = vector.shape_cast %245 : vector<8xf32> to vector<8x1xf32>
    %247 = arith.mulf %244, %244 : vector<8x768xf32>
    %cst_93 = arith.constant dense<0.000000e+00> : vector<8xf32>
    %248 = vector.multi_reduction <add>, %247, %cst_93 [1] : vector<8x768xf32> to vector<8xf32>
    %249 = vector.shape_cast %248 : vector<8xf32> to vector<8x1xf32>
    %cst_94 = arith.constant 0.00130208337 : f32
    %250 = vector.broadcast %cst_94 : f32 to vector<8x1xf32>
    %251 = arith.mulf %246, %250 : vector<8x1xf32>
    %cst_95 = arith.constant 0.00130208337 : f32
    %252 = vector.broadcast %cst_95 : f32 to vector<8x1xf32>
    %253 = arith.mulf %249, %252 : vector<8x1xf32>
    %254 = arith.mulf %251, %251 : vector<8x1xf32>
    %255 = arith.subf %253, %254 : vector<8x1xf32>
    %cst_96 = arith.constant 0.000000e+00 : f32
    %256 = vector.broadcast %cst_96 : f32 to vector<8x1xf32>
    %257 = arith.maximumf %255, %256 : vector<8x1xf32>
    %c9_97 = arith.constant 9 : index
    %258 = memref.load %arg2[%c9_97] : memref<13xf32, #tpu.memory_space<smem>>
    %cst_98 = arith.constant 9.99999974E-6 : f32
    %259 = vector.broadcast %cst_98 : f32 to vector<8x1xf32>
    %260 = arith.addf %257, %259 : vector<8x1xf32>
    %261 = math.rsqrt %260 : vector<8x1xf32>
    %262 = vector.broadcast %258 : f32 to vector<8x1xf32>
    %263 = arith.mulf %262, %261 : vector<8x1xf32>
    %264 = vector.broadcast %251 : vector<8x1xf32> to vector<8x768xf32>
    %265 = arith.subf %244, %264 : vector<8x768xf32>
    %266 = vector.broadcast %263 : vector<8x1xf32> to vector<8x768xf32>
    %267 = arith.mulf %265, %266 : vector<8x768xf32>
    %268 = arith.addf %241, %267 : vector<8x768xf32>
    %c0_99 = arith.constant 0 : index
    %c10 = arith.constant 10 : index
    %c0_100 = arith.constant 0 : index
    %c0_101 = arith.constant 0 : index
    %269 = vector.load %arg3[%c0_99, %c10, %c0_100, %c0_101] : memref<1x13x8x768xbf16, #tpu.memory_space<vmem>>, vector<1x1x8x768xbf16>
    %270 = vector.shape_cast %269 : vector<1x1x8x768xbf16> to vector<8x768xbf16>
    %271 = arith.extf %270 : vector<8x768xbf16> to vector<8x768xf32>
    %cst_102 = arith.constant dense<0.000000e+00> : vector<8xf32>
    %272 = vector.multi_reduction <add>, %271, %cst_102 [1] : vector<8x768xf32> to vector<8xf32>
    %273 = vector.shape_cast %272 : vector<8xf32> to vector<8x1xf32>
    %274 = arith.mulf %271, %271 : vector<8x768xf32>
    %cst_103 = arith.constant dense<0.000000e+00> : vector<8xf32>
    %275 = vector.multi_reduction <add>, %274, %cst_103 [1] : vector<8x768xf32> to vector<8xf32>
    %276 = vector.shape_cast %275 : vector<8xf32> to vector<8x1xf32>
    %cst_104 = arith.constant 0.00130208337 : f32
    %277 = vector.broadcast %cst_104 : f32 to vector<8x1xf32>
    %278 = arith.mulf %273, %277 : vector<8x1xf32>
    %cst_105 = arith.constant 0.00130208337 : f32
    %279 = vector.broadcast %cst_105 : f32 to vector<8x1xf32>
    %280 = arith.mulf %276, %279 : vector<8x1xf32>
    %281 = arith.mulf %278, %278 : vector<8x1xf32>
    %282 = arith.subf %280, %281 : vector<8x1xf32>
    %cst_106 = arith.constant 0.000000e+00 : f32
    %283 = vector.broadcast %cst_106 : f32 to vector<8x1xf32>
    %284 = arith.maximumf %282, %283 : vector<8x1xf32>
    %c10_107 = arith.constant 10 : index
    %285 = memref.load %arg2[%c10_107] : memref<13xf32, #tpu.memory_space<smem>>
    %cst_108 = arith.constant 9.99999974E-6 : f32
    %286 = vector.broadcast %cst_108 : f32 to vector<8x1xf32>
    %287 = arith.addf %284, %286 : vector<8x1xf32>
    %288 = math.rsqrt %287 : vector<8x1xf32>
    %289 = vector.broadcast %285 : f32 to vector<8x1xf32>
    %290 = arith.mulf %289, %288 : vector<8x1xf32>
    %291 = vector.broadcast %278 : vector<8x1xf32> to vector<8x768xf32>
    %292 = arith.subf %271, %291 : vector<8x768xf32>
    %293 = vector.broadcast %290 : vector<8x1xf32> to vector<8x768xf32>
    %294 = arith.mulf %292, %293 : vector<8x768xf32>
    %295 = arith.addf %268, %294 : vector<8x768xf32>
    %c0_109 = arith.constant 0 : index
    %c11 = arith.constant 11 : index
    %c0_110 = arith.constant 0 : index
    %c0_111 = arith.constant 0 : index
    %296 = vector.load %arg3[%c0_109, %c11, %c0_110, %c0_111] : memref<1x13x8x768xbf16, #tpu.memory_space<vmem>>, vector<1x1x8x768xbf16>
    %297 = vector.shape_cast %296 : vector<1x1x8x768xbf16> to vector<8x768xbf16>
    %298 = arith.extf %297 : vector<8x768xbf16> to vector<8x768xf32>
    %cst_112 = arith.constant dense<0.000000e+00> : vector<8xf32>
    %299 = vector.multi_reduction <add>, %298, %cst_112 [1] : vector<8x768xf32> to vector<8xf32>
    %300 = vector.shape_cast %299 : vector<8xf32> to vector<8x1xf32>
    %301 = arith.mulf %298, %298 : vector<8x768xf32>
    %cst_113 = arith.constant dense<0.000000e+00> : vector<8xf32>
    %302 = vector.multi_reduction <add>, %301, %cst_113 [1] : vector<8x768xf32> to vector<8xf32>
    %303 = vector.shape_cast %302 : vector<8xf32> to vector<8x1xf32>
    %cst_114 = arith.constant 0.00130208337 : f32
    %304 = vector.broadcast %cst_114 : f32 to vector<8x1xf32>
    %305 = arith.mulf %300, %304 : vector<8x1xf32>
    %cst_115 = arith.constant 0.00130208337 : f32
    %306 = vector.broadcast %cst_115 : f32 to vector<8x1xf32>
    %307 = arith.mulf %303, %306 : vector<8x1xf32>
    %308 = arith.mulf %305, %305 : vector<8x1xf32>
    %309 = arith.subf %307, %308 : vector<8x1xf32>
    %cst_116 = arith.constant 0.000000e+00 : f32
    %310 = vector.broadcast %cst_116 : f32 to vector<8x1xf32>
    %311 = arith.maximumf %309, %310 : vector<8x1xf32>
    %c11_117 = arith.constant 11 : index
    %312 = memref.load %arg2[%c11_117] : memref<13xf32, #tpu.memory_space<smem>>
    %cst_118 = arith.constant 9.99999974E-6 : f32
    %313 = vector.broadcast %cst_118 : f32 to vector<8x1xf32>
    %314 = arith.addf %311, %313 : vector<8x1xf32>
    %315 = math.rsqrt %314 : vector<8x1xf32>
    %316 = vector.broadcast %312 : f32 to vector<8x1xf32>
    %317 = arith.mulf %316, %315 : vector<8x1xf32>
    %318 = vector.broadcast %305 : vector<8x1xf32> to vector<8x768xf32>
    %319 = arith.subf %298, %318 : vector<8x768xf32>
    %320 = vector.broadcast %317 : vector<8x1xf32> to vector<8x768xf32>
    %321 = arith.mulf %319, %320 : vector<8x768xf32>
    %322 = arith.addf %295, %321 : vector<8x768xf32>
    %c0_119 = arith.constant 0 : index
    %c12 = arith.constant 12 : index
    %c0_120 = arith.constant 0 : index
    %c0_121 = arith.constant 0 : index
    %323 = vector.load %arg3[%c0_119, %c12, %c0_120, %c0_121] : memref<1x13x8x768xbf16, #tpu.memory_space<vmem>>, vector<1x1x8x768xbf16>
    %324 = vector.shape_cast %323 : vector<1x1x8x768xbf16> to vector<8x768xbf16>
    %325 = arith.extf %324 : vector<8x768xbf16> to vector<8x768xf32>
    %cst_122 = arith.constant dense<0.000000e+00> : vector<8xf32>
    %326 = vector.multi_reduction <add>, %325, %cst_122 [1] : vector<8x768xf32> to vector<8xf32>
    %327 = vector.shape_cast %326 : vector<8xf32> to vector<8x1xf32>
    %328 = arith.mulf %325, %325 : vector<8x768xf32>
    %cst_123 = arith.constant dense<0.000000e+00> : vector<8xf32>
    %329 = vector.multi_reduction <add>, %328, %cst_123 [1] : vector<8x768xf32> to vector<8xf32>
    %330 = vector.shape_cast %329 : vector<8xf32> to vector<8x1xf32>
    %cst_124 = arith.constant 0.00130208337 : f32
    %331 = vector.broadcast %cst_124 : f32 to vector<8x1xf32>
    %332 = arith.mulf %327, %331 : vector<8x1xf32>
    %cst_125 = arith.constant 0.00130208337 : f32
    %333 = vector.broadcast %cst_125 : f32 to vector<8x1xf32>
    %334 = arith.mulf %330, %333 : vector<8x1xf32>
    %335 = arith.mulf %332, %332 : vector<8x1xf32>
    %336 = arith.subf %334, %335 : vector<8x1xf32>
    %cst_126 = arith.constant 0.000000e+00 : f32
    %337 = vector.broadcast %cst_126 : f32 to vector<8x1xf32>
    %338 = arith.maximumf %336, %337 : vector<8x1xf32>
    %c12_127 = arith.constant 12 : index
    %339 = memref.load %arg2[%c12_127] : memref<13xf32, #tpu.memory_space<smem>>
    %cst_128 = arith.constant 9.99999974E-6 : f32
    %340 = vector.broadcast %cst_128 : f32 to vector<8x1xf32>
    %341 = arith.addf %338, %340 : vector<8x1xf32>
    %342 = math.rsqrt %341 : vector<8x1xf32>
    %343 = vector.broadcast %339 : f32 to vector<8x1xf32>
    %344 = arith.mulf %343, %342 : vector<8x1xf32>
    %345 = vector.broadcast %332 : vector<8x1xf32> to vector<8x768xf32>
    %346 = arith.subf %325, %345 : vector<8x768xf32>
    %347 = vector.broadcast %344 : vector<8x1xf32> to vector<8x768xf32>
    %348 = arith.mulf %346, %347 : vector<8x768xf32>
    %349 = arith.addf %322, %348 : vector<8x768xf32>
    %350 = arith.truncf %349 : vector<8x768xf32> to vector<8x768xbf16>
    %c0_129 = arith.constant 0 : index
    %c0_130 = arith.constant 0 : index
    %c0_131 = arith.constant 0 : index
    %351 = vector.load %arg4[%c0_129, %c0_130, %c0_131] : memref<1x8x768xbf16, #tpu.memory_space<vmem>>, vector<1x8x768xbf16>
    %352 = vector.shape_cast %351 : vector<1x8x768xbf16> to vector<8x768xbf16>
    %353 = vector.shape_cast %350 : vector<8x768xbf16> to vector<1x8x768xbf16>
    tpu.vector_store %arg4[%c0_129, %c0_130, %c0_131], %353 {strides = array<i32>} : memref<1x8x768xbf16, #tpu.memory_space<vmem>>, vector<1x8x768xbf16>,
    return
  }
  func.func @transform_0(%arg0: i32, %arg1: i32) -> i32 {
    %c0_i32 = arith.constant 0 : i32
    %c0_i32_0 = arith.constant 0 : i32
    return %c0_i32 : i32
  }
  func.func @transform_1(%arg0: i32, %arg1: i32) -> (i32, i32, i32, i32) {
    %c0_i32 = arith.constant 0 : i32
    %c0_i32_0 = arith.constant 0 : i32
    %c0_i32_1 = arith.constant 0 : i32
    return %arg0, %c0_i32, %arg1, %c0_i32_0 : i32, i32, i32, i32
  }
  func.func @transform_2(%arg0: i32, %arg1: i32) -> (i32, i32, i32) {
    %c0_i32 = arith.constant 0 : i32
    %c0_i32_0 = arith.constant 0 : i32
    return %arg0, %arg1, %c0_i32 : i32, i32, i32
  }
}

</mosaic_0001>

<bundles_post_ra>
// kernel: tpu_custom_call.1
= control target key start
LH: loop header
LB: loop body
LE: loop exit
PB: predicated region body
PF: predicated region fallthrough
CT: control target
= control target key end

     0   :  { %s2427_s0 = inlined_call_operand.hbm [shape: f32[13], index: 0, kind: input, shape index: {}]   ;;  %s2428_s1 = inlined_call_operand.hbm [shape: bf16[2,13,16,768], index: 1, kind: input, shape index: {}]   ;;  %s2429_s2 = inlined_call_operand.hbm [shape: bf16[2,16,768], index: 2, kind: output, shape index: {}]  }
   0x1   :  { %2490 = sst [smem:[#allocation57_spill]] %s2427_s0 }
   0x2   :  { %7 = vsyncpa [#allocation5], 0 }
   0x3   :  { %8 = vsyncpa [#allocation3], 0 }
   0x4   :  { %10 = vsyncpa [#allocation3 + $0x1], 0 }
   0x5   :  { %11 = vsyncpa [#allocation4], 0 }
   0x6   :  { %13 = vsyncpa [#allocation4 + $0x1], 0  ;;  %s1434_s9 = smov 0   ;;  %s1436_s10 = smov 0  }
   0x7   :  { %s1438_s11 = smov 0   ;;  %s1440_s12 = smov 0  }
   0x8   :  { %s1442_s13 = smov 0   ;;  %s1444_s14 = smov 0  }
   0x9   :  { %s1446_s15 = smov 0   ;;  %s1448_s16 = smov 0  }
   0xa LB: > { %2491 = sst [smem:[#allocation11_spill]] %s1383_s9  ;;  %s1082_s17 = sadd.s32 4294967295, %s1411_s16   ;;  %s1411_s16 = sphi %s1448_s16, %s19_s16   ;;  %s1407_s15 = sphi %s1446_s15, %s2650_s15   ;;  %s1403_s14 = sphi %s1444_s14, %s2645_s14   ;;  %s1399_s13 = sphi %s1442_s13, %s2649_s13   ;;  %s1395_s12 = sphi %s1440_s12, %s2644_s12   ;;  %s1391_s11 = sphi %s1438_s11, %s2648_s11   ;;  %s1387_s10 = sphi %s1436_s10, %s2647_s10   ;;  %s1383_s9 = sphi %s1434_s9, %s2646_s9  }
   0xb   : > { %2492 = sst [smem:[#allocation12_spill]] %s1403_s14  ;;  %s1083_s18 = sadd.s32 4294967294, %s1411_s16  }
   0xc   : > { %2493 = sst [smem:[#allocation13_spill]] %s1411_s16  ;;  %s61_s19 = sadd.s32 1, %s1391_s11 }
   0xd   : > { %p68_p0 = scmp.ne.s32.totalorder %s1391_s11, %s1387_s10  ;;  %p69_p1 = scmp.eq.s32.totalorder %s1411_s16, 0 }
   0xe   : > { %p74_p2 = scmp.ne.s32.totalorder %s1387_s10, %s1383_s9  ;;  %p1482_p3 = scmp.eq.s32.totalorder %s1082_s17, 0 }
   0xf   : > { %p100_p4 = scmp.eq.s32.totalorder %s1082_s17, 3  ;;  %p70_p5 = por %p69_p1, %p68_p0 }
  0x10   : > { %p106_p6 = scmp.eq.s32.totalorder %s1083_s18, 3  ;;  %p1488_p7 = por %p1482_p3, %p74_p2 }
  0x11   : > { %p1492_p8 = por %p100_p4, %p68_p0  ;;  %p1084_p10 = scmp.ge.s32.totalorder %s1411_s16, 1 }
  0x12   : > { %p1496_p9 = por %p106_p6, %p74_p2  ;;  %p113_p11 = scmp.lt.s32.totalorder %s1411_s16, 5 }
  0x13   : > { %p1175_p13 = scmp.lt.s32.totalorder %s1411_s16, 4  ;;  %s28_s26 = sadd.s32 1, %s1403_s14 }
  0x14   : > { %s2497_s23 = scalar_select %p1496_p9, 1, 0 }
  0x15   : > { %p1502_p12 = pnand %p1084_p10, %p113_p11  ;;  %p1509_p1 = pnand %p1175_p13, %p70_p5 }
  0x16   : > { %2498 = sst [smem:[#allocation14_spill]] %s2497_s23  ;;  %s31_s27 = sadd.s32 1, %s1407_s15 }
  0x17   : > { %p1162_p0 = pneg %p1502_p12  ;;  %p29_p4 = scmp.ge.s32.totalorder %s28_s26, 2 }
  0x18   : > { %s1413_s28 = smov [#allocation2]   ;;  %s2501_s0 = sld [smem:[#allocation57_spill]] }
  0x19   : > { %p1163_p2 = pnand %p1162_p0, %p1482_p3  ;;  %s2652_s26 = smov (%p29_p4, %s28_s26), 0 }
  0x1a   : > { %2502 = sst [smem:[#allocation15_spill]] %s2652_s26  ;;  %s2654_s27 = smov (!%p29_p4, %s31_s27), %s1407_s15 }
  0x1b   : > { %s57_s3 = ssub.s32 %s1403_s14, %s2652_s26  ;;  %s135_s4 = sand.u32 1, %s1391_s11  }
  0x1c   : > { %p33_p5 = scmp.ge.s32.totalorder %s2654_s27, 2  ;;  %s1147_s5 = smul.u32 312, %s135_s4 }
  0x1d   : > { %s1148_s6 = smul.u32 6, %s1403_s14  ;;  %s136_s16 = scalar_lea.sflag [#allocation3], %s135_s4 }
  0x1e   : > { %1165 = dma.hbm_to_smem (!%p1163_p2), %s2501_s0, 16, %s1413_s28, [#allocation5]  }
  0x1f   : > { %s2656_s27 = smov (%p33_p5, %s2654_s27), 0  ;;  %s1149_s8 = smul.u32 156, %s1407_s15 }
  0x20   : > { %s56_s7 = ssub.s32 %s1407_s15, %s2656_s27  ;;  %s139_s18 = scalar_lea.vmem [#allocation6], %s1147_s5 }
  0x21   : > { %s58_s17 = sor.u32 %s57_s3, %s56_s7  ;;  %s148_s28 = sshll.u32 %s139_s18, 4  ;;  %s149_s28 = int_to_ptr.vmem [resolvable:$true] %s148_s28 }
  0x22   : > { %p59_p6 = scmp.eq.s32.totalorder %s58_s17, 0  ;;  %s145_s29 = sadd.s32 %s1149_s8, %s1148_s6 }
  0x23   : > { %s1087_s30 = sshll.u32 %s145_s29, 6  ;;  %p1285_p10 = pneg %p1509_p1 }
  0x24   : > { %s1535_s0 = scalar_select %p59_p6, %s1391_s11, %s61_s19  }
  0x25   : > { %s147_s9 = scalar_lea.hbm %s2428_s1, %s1087_s30  ;;  %s1296_s14 = scalar_lea.vmem %s149_s28, 4992 }
  0x26   : > { %p1297_p11 = scmp.ne.s32.totalorder %s149_s28, %s1296_s14  ;;  %s1414_s3 = smov [#allocation6]  }
  0x27   : > { %s1301_s5 = sshll.u32 %s1414_s3, 4  ;;  %s1302_s5 = int_to_ptr.vmem [resolvable:$false] %s1301_s5 }
  0x28   : > { %p1299_p13 = pnand %p1297_p11, %p1285_p10  ;;  %s1303_s6 = scalar_lea.vmem %s1302_s5, 9984 }
  0x29   : > { %p1304_p2 = scmp.lt.s32.totalorder %s149_s28, %s1302_s5  ;;  %p1305_p4 = scmp.lt.s32.totalorder %s1303_s6, %s1296_s14 }
  0x2a   : > { %p1300_p0 = pneg %p1299_p13 }
  0x2b   : > { %p1306_p5 = por %p1305_p4, %p1304_p2 }
  0x2d   : > { %p1307_p6 = pnand %p1306_p5, %p1300_p0 }
  0x2f   : > { %1310 = shalt.err (!%p1307_p6)
}
  0x30   : > { %s1415_s19 = smov 768   ;;  %s1416_s23 = smov 384  }
  0x31   : > { %s1417_s26 = smov 24   ;;  %160 = sbr.rel (%p1502_p12) target bundleno = 331 (0x14b), region = 28 }
  0x32   : > { %1169 = dma.hbm_to_vmem [thread:$0]  (!%p1509_p1), %s147_s9, 4992, %s149_s28, %s136_s16, %s1415_s19, %s1416_s23, %s1417_s26  }
  0x36   : > { %1370 = dma.done.wait (%p1482_p3), [#allocation5], 16  }
  0x37   : > { %1372 = vsyncadd (%p1482_p3), [#allocation5], 4294967280  ;;  %s1551_s14 = sand.u32 1, %s1387_s10  }
  0x38   : > { %s1150_s4 = smul.u32 312, %s1551_s14  ;;  %s167_s7 = scalar_lea.sflag [#allocation3], %s1551_s14 }
  0x3a   : > { %s1555_s8 = scalar_lea.vmem [#allocation6], %s1150_s4 }
  0x3b   : > { %1374 = dma.done.wait (%p1488_p7), %s167_s7, 4992  }
  0x3c   : > { %1376 = vsyncadd (%p1488_p7), %s167_s7, 4294962304 }
  0x3d   : > { %175 = sfence }
  0x3e   : > { %v192_v0 = vld [vmem:[%s1555_s8] sm:$0xff]  ;;  %v193_v1 = vld [vmem:[%s1555_s8 + $0x8] sm:$0xff]  ;;  %v194_v2 = vld [vmem:[%s1555_s8 + $0x10] sm:$0xff]  ;;  %s1990_s9 = sld [smem:[#allocation2]]  ;;  %s1151_s6 = smul.u32 24, %s1551_s14 }
  0x3f   : > { %v1564_v3 = vunpack.c.l.bf16 %v192_v0  ;;  %v1566_v4 = vunpack.c.h.bf16 %v192_v0  ;;  %v1568_v5 = vunpack.c.l.bf16 %v193_v1  ;;  %v1570_v6 = vunpack.c.h.bf16 %v193_v1  ;;  %v1090_v7 = vld [vmem:[%s1555_s8 + $0x18] sm:$0xff]  ;;  %v1091_v8 = vld [vmem:[%s1555_s8 + $0x20] sm:$0xff]  ;;  %v1092_v11 = vld [vmem:[%s1555_s8 + $0x28] sm:$0xff]  ;;  %s1992_s16 = sld [smem:[#allocation2 + $0x1]]  ;;  %s1152_s19 = smul.u32 6, %s1395_s12 }
  0x40   : > { %v1574_v9 = vunpack.c.l.bf16 %v194_v2  ;;  %v1576_v10 = vunpack.c.h.bf16 %v194_v2  ;;  %v1579_v12 = vunpack.c.l.bf16 %v1090_v7  ;;  %v1581_v13 = vunpack.c.h.bf16 %v1090_v7  ;;  %v1094_v29 = vld [vmem:[%s1555_s8 + $0x30] sm:$0xff]  ;;  %v1095_v34 = vld [vmem:[%s1555_s8 + $0x38] sm:$0xff]  ;;  %v1096_v39 = vld [vmem:[%s1555_s8 + $0x40] sm:$0xff]  ;;  %s1994_s20 = sld [smem:[#allocation2 + $0x2]]  ;;  %s1153_s23 = smul.u32 12, %s1399_s13 }
  0x41   : > { %v201_v14 = vadd.f32 %v1566_v4, %v1564_v3  ;;  %v208_v15 = vmul.f32 %v1564_v3, %v1564_v3  ;;  %v209_v16 = vmul.f32 %v1566_v4, %v1566_v4  ;;  %v210_v17 = vmul.f32 %v1568_v5, %v1568_v5  ;;  %v1098_v56 = vld [vmem:[%s1555_s8 + $0x48] sm:$0xff]  ;;  %v1099_v61 = vld [vmem:[%s1555_s8 + $0x50] sm:$0xff]  ;;  %v1100_v2 = vld [vmem:[%s1555_s8 + $0x58] sm:$0xff]  ;;  %s1996_s21 = sld [smem:[#allocation2 + $0x3]]  ;;  %s191_s26 = scalar_lea.vmem [#allocation7], %s1151_s6 }
  0x42   : > { %v211_v18 = vmul.f32 %v1570_v6, %v1570_v6  ;;  %v212_v19 = vmul.f32 %v1574_v9, %v1574_v9  ;;  %v1595_v20 = vunpack.c.l.bf16 %v1091_v8  ;;  %v1598_v23 = vunpack.c.h.bf16 %v1091_v8  ;;  %s2000_s24 = sld [smem:[#allocation2 + $0x4]]  ;;  %s979_s12 = sadd.s32 %s1153_s23, %s1152_s19 }
  0x43   : > { %v202_v21 = vadd.f32 %v201_v14, %v1568_v5  ;;  %v214_v22 = vadd.f32 %v209_v16, %v208_v15  ;;  %v1600_v24 = vunpack.c.l.bf16 %v1092_v11  ;;  %v213_v25 = vmul.f32 %v1576_v10, %v1576_v10  ;;  %s2002_s25 = sld [smem:[#allocation2 + $0x5]]  ;;  %s1141_s13 = sshll.u32 %s979_s12, 6 }
  0x44   : > { %v253_v26 = vadd.f32 %v1581_v13, %v1579_v12  ;;  %v260_v27 = vmul.f32 %v1579_v12, %v1579_v12  ;;  %v261_v28 = vmul.f32 %v1581_v13, %v1581_v13  ;;  %v1612_v32 = vunpack.c.h.bf16 %v1092_v11  ;;  %s2004_s17 = sld [smem:[#allocation2 + $0x6]]  ;;  %s983_s4 = sshll.u32 %s191_s26, 4  ;;  %s984_s4 = int_to_ptr.vmem [resolvable:$true] %s983_s4 }
  0x45   : > { %v203_v30 = vadd.f32 %v202_v21, %v1570_v6  ;;  %v215_v31 = vadd.f32 %v214_v22, %v210_v17  ;;  %v262_v33 = vmul.f32 %v1595_v20, %v1595_v20  ;;  %v263_v36 = vmul.f32 %v1598_v23, %v1598_v23  ;;  %s2008_s18 = sld [smem:[#allocation2 + $0x7]] }
  0x46   : > { %v254_v35 = vadd.f32 %v253_v26, %v1595_v20  ;;  %v264_v37 = vmul.f32 %v1600_v24, %v1600_v24  ;;  %v266_v38 = vadd.f32 %v261_v28, %v260_v27  ;;  %v1624_v42 = vunpack.c.l.bf16 %v1094_v29  ;;  %v1102_v26 = vld [vmem:[%s1555_s8 + $0x60] sm:$0xff]  ;;  %s2012_s28 = sld [smem:[#allocation2 + $0x8]] }
  0x47   : > { %v204_v40 = vadd.f32 %v203_v30, %v1574_v9  ;;  %v216_v41 = vadd.f32 %v215_v31, %v211_v18  ;;  %v1626_v43 = vunpack.c.h.bf16 %v1094_v29  ;;  %v1629_v46 = vunpack.c.l.bf16 %v1095_v34  ;;  %v1103_v31 = vld [vmem:[%s1555_s8 + $0x68] sm:$0xff]  ;;  %s2014_s29 = sld [smem:[#allocation2 + $0x9]] }
  0x48   : > { %v255_v44 = vadd.f32 %v254_v35, %v1598_v23  ;;  %v267_v45 = vadd.f32 %v266_v38, %v262_v33  ;;  %v1631_v47 = vunpack.c.h.bf16 %v1095_v34  ;;  %v265_v50 = vmul.f32 %v1612_v32, %v1612_v32  ;;  %s2016_s30 = sld [smem:[#allocation2 + $0xa]] }
  0x49   : > { %v205_v48 = vadd.f32 %v204_v40, %v1576_v10  ;;  %v217_v49 = vadd.f32 %v216_v41, %v212_v19  ;;  %v1636_v51 = vunpack.c.l.bf16 %v1096_v39  ;;  %v311_v54 = vadd.f32 %v1626_v43, %v1624_v42  ;;  %s2018_s3 = sld [smem:[#allocation2 + $0xb]] }
  0x4a   : > { %v256_v52 = vadd.f32 %v255_v44, %v1600_v24  ;;  %v268_v53 = vadd.f32 %v267_v45, %v263_v36  ;;  %v318_v55 = vmul.f32 %v1624_v42, %v1624_v42  ;;  %v1644_v58 = vunpack.c.h.bf16 %v1096_v39  ;;  %s2022_s5 = sld [smem:[#allocation2 + $0xc]] }
  0x4b   : > { %206 = vadd.xlane.f32.xlu0 %v205_v48  ;;  %v218_v57 = vadd.f32 %v217_v49, %v213_v25  ;;  %v319_v59 = vmul.f32 %v1626_v43, %v1626_v43  ;;  %v320_v60 = vmul.f32 %v1629_v46, %v1629_v46  ;;  %v312_v0 = vadd.f32 %v311_v54, %v1629_v46 }
  0x4c   : > { %v257_v62 = vadd.f32 %v256_v52, %v1612_v32  ;;  %v269_v63 = vadd.f32 %v268_v53, %v264_v37  ;;  %v321_v1 = vmul.f32 %v1631_v47, %v1631_v47  ;;  %v322_v7 = vmul.f32 %v1636_v51, %v1636_v51  ;;  %v1104_v37 = vld [vmem:[%s1555_s8 + $0x70] sm:$0xff] }
  0x4d   : > { %219 = vadd.xlane.f32.xlu1 %v218_v57  ;;  %v324_v8 = vadd.f32 %v319_v59, %v318_v55  ;;  %v1658_v11 = vunpack.c.l.bf16 %v1098_v56  ;;  %v1660_v14 = vunpack.c.h.bf16 %v1098_v56  ;;  %v313_v16 = vadd.f32 %v312_v0, %v1631_v47 }
  0x4e   : > { %v270_v15 = vadd.f32 %v269_v63, %v265_v50  ;;  %v1663_v17 = vunpack.c.l.bf16 %v1099_v61  ;;  %v1665_v18 = vunpack.c.h.bf16 %v1099_v61  ;;  %v1667_v21 = vunpack.c.l.bf16 %v1100_v2 }
  0x4f   : > { %258 = vadd.xlane.f32.xlu0 %v257_v62  ;;  %v325_v19 = vadd.f32 %v324_v8, %v320_v60  ;;  %v1669_v22 = vunpack.c.h.bf16 %v1100_v2  ;;  %v369_v25 = vadd.f32 %v1660_v14, %v1658_v11  ;;  %v314_v27 = vadd.f32 %v313_v16, %v1636_v51  ;;  %v1106_v60 = vld [vmem:[%s1555_s8 + $0x78] sm:$0xff]  ;;  %v1108_v2 = vld [vmem:[%s1555_s8 + $0x88] sm:$0xff] }
  0x50   : > { %v376_v28 = vmul.f32 %v1658_v11, %v1658_v11  ;;  %v377_v29 = vmul.f32 %v1660_v14, %v1660_v14  ;;  %v378_v30 = vmul.f32 %v1663_v17, %v1663_v17  ;;  %v323_v33 = vmul.f32 %v1644_v58, %v1644_v58 }
  0x51   : > { %271 = vadd.xlane.f32.xlu1 %v270_v15  ;;  %v326_v34 = vadd.f32 %v325_v19, %v321_v1  ;;  %v370_v35 = vadd.f32 %v369_v25, %v1663_v17  ;;  %v379_v36 = vmul.f32 %v1665_v18, %v1665_v18  ;;  %v315_v38 = vadd.f32 %v314_v27, %v1644_v58  ;;  %v1107_v1 = vld [vmem:[%s1555_s8 + $0x80] sm:$0xff] }
  0x52   : > { %v380_v39 = vmul.f32 %v1667_v21, %v1667_v21  ;;  %v382_v40 = vadd.f32 %v377_v29, %v376_v28  ;;  %v1691_v41 = vunpack.c.l.bf16 %v1102_v26  ;;  %v1694_v48 = vunpack.c.h.bf16 %v1102_v26 }
  0x53   : > { %v327_v44 = vadd.f32 %v326_v34, %v322_v7  ;;  %v371_v45 = vadd.f32 %v370_v35, %v1665_v18  ;;  %v1696_v49 = vunpack.c.l.bf16 %v1103_v31  ;;  %316 = vadd.xlane.f32.xlu0 %v315_v38  ;;  %v381_v50 = vmul.f32 %v1669_v22, %v1669_v22 }
  0x54   : > { %v383_v52 = vadd.f32 %v382_v40, %v378_v30  ;;  %v1700_v53 = vunpack.c.h.bf16 %v1103_v31  ;;  %v1702_v54 = vunpack.c.l.bf16 %v1104_v37  ;;  %v427_v57 = vadd.f32 %v1694_v48, %v1691_v41 }
  0x55   : > { %v328_v55 = vadd.f32 %v327_v44, %v323_v33  ;;  %v372_v56 = vadd.f32 %v371_v45, %v1667_v21  ;;  %v434_v59 = vmul.f32 %v1691_v41, %v1691_v41  ;;  %v1710_v62 = vunpack.c.h.bf16 %v1104_v37  ;;  %v1110_v37 = vld [vmem:[%s1555_s8 + $0x90] sm:$0xff]  ;;  %v1111_v45 = vld [vmem:[%s1555_s8 + $0x98] sm:$0xff] }
  0x56   : > { %v384_v61 = vadd.f32 %v383_v52, %v379_v36  ;;  %v435_v63 = vmul.f32 %v1694_v48, %v1694_v48  ;;  %v436_v0 = vmul.f32 %v1696_v49, %v1696_v49  ;;  %v428_v8 = vadd.f32 %v427_v57, %v1696_v49  ;;  %v1112_v57 = vld [vmem:[%s1555_s8 + $0xa0] sm:$0xff] }
  0x57   : > { %329 = vadd.xlane.f32.xlu1 %v328_v55  ;;  %v373_v7 = vadd.f32 %v372_v56, %v1669_v22  ;;  %v437_v15 = vmul.f32 %v1700_v53, %v1700_v53  ;;  %v438_v16 = vmul.f32 %v1702_v54, %v1702_v54  ;;  %v1724_v26 = vunpack.c.l.bf16 %v1106_v60 }
  0x58   : > { %v385_v19 = vadd.f32 %v384_v61, %v380_v39  ;;  %v440_v25 = vadd.f32 %v435_v63, %v434_v59  ;;  %v1726_v27 = vunpack.c.h.bf16 %v1106_v60  ;;  %v429_v28 = vadd.f32 %v428_v8, %v1700_v53 }
  0x59   : > { %374 = vadd.xlane.f32.xlu0 %v373_v7  ;;  %v1729_v29 = vunpack.c.l.bf16 %v1107_v1  ;;  %v1731_v30 = vunpack.c.h.bf16 %v1107_v1  ;;  %v1733_v31 = vunpack.c.l.bf16 %v1108_v2  ;;  %v1735_v35 = vunpack.c.h.bf16 %v1108_v2 }
  0x5a   : > { %v386_v33 = vadd.f32 %v385_v19, %v381_v50  ;;  %v441_v34 = vadd.f32 %v440_v25, %v436_v0  ;;  %v485_v36 = vadd.f32 %v1726_v27, %v1724_v26  ;;  %v430_v38 = vadd.f32 %v429_v28, %v1702_v54 }
  0x5b   : > { %v492_v39 = vmul.f32 %v1724_v26, %v1724_v26  ;;  %v493_v40 = vmul.f32 %v1726_v27, %v1726_v27  ;;  %v494_v44 = vmul.f32 %v1729_v29, %v1729_v29  ;;  %v439_v50 = vmul.f32 %v1710_v62, %v1710_v62 }
  0x5c   : > { %387 = vadd.xlane.f32.xlu1 %v386_v33  ;;  %v442_v52 = vadd.f32 %v441_v34, %v437_v15  ;;  %v486_v55 = vadd.f32 %v485_v36, %v1729_v29  ;;  %v495_v56 = vmul.f32 %v1731_v30, %v1731_v30  ;;  %v431_v59 = vadd.f32 %v430_v38, %v1710_v62  ;;  %v1114_v36 = vld [vmem:[%s1555_s8 + $0xa8] sm:$0xff] }
  0x5d   : > { %v496_v60 = vmul.f32 %v1733_v31, %v1733_v31  ;;  %v498_v61 = vadd.f32 %v493_v40, %v492_v39  ;;  %v1757_v63 = vunpack.c.l.bf16 %v1110_v37  ;;  %v1760_v2 = vunpack.c.h.bf16 %v1110_v37 }
  0x5e   : > { %v443_v0 = vadd.f32 %v442_v52, %v438_v16  ;;  %v487_v1 = vadd.f32 %v486_v55, %v1731_v30  ;;  %v1762_v7 = vunpack.c.l.bf16 %v1111_v45  ;;  %432 = vadd.xlane.f32.xlu0 %v431_v59  ;;  %v497_v8 = vmul.f32 %v1735_v35, %v1735_v35 }
  0x5f   : > { %2503 = vst [vmem:[#allocation16_spill] sm:$0xff] %v1760_v2  ;;  %v499_v15 = vadd.f32 %v498_v61, %v494_v44  ;;  %v1766_v19 = vunpack.c.h.bf16 %v1111_v45  ;;  %v1768_v25 = vunpack.c.l.bf16 %v1112_v57  ;;  %v543_v33 = vadd.f32 %v1760_v2, %v1757_v63  ;;  %v1115_v44 = vld [vmem:[%s1555_s8 + $0xb0] sm:$0xff]  ;;  %v1116_v45 = vld [vmem:[%s1555_s8 + $0xb8] sm:$0xff] }
  0x60   : > { %2504 = vst [vmem:[#allocation17_spill] sm:$0xff] %v1762_v7  ;;  %v444_v28 = vadd.f32 %v443_v0, %v439_v50  ;;  %v488_v16 = vadd.f32 %v487_v1, %v1733_v31  ;;  %v550_v34 = vmul.f32 %v1757_v63, %v1757_v63  ;;  %v1776_v38 = vunpack.c.h.bf16 %v1112_v57 }
  0x61   : > { %2505 = vst [vmem:[#allocation18_spill] sm:$0xff] %v1766_v19  ;;  %2506 = vst [vmem:[#allocation19_spill] sm:$0xff] %v1768_v25  ;;  %v500_v37 = vadd.f32 %v499_v15, %v495_v56  ;;  %v551_v39 = vmul.f32 %v1760_v2, %v1760_v2  ;;  %v552_v40 = vmul.f32 %v1762_v7, %v1762_v7  ;;  %v1790_v61 = vunpack.c.l.bf16 %v1114_v36 }
  0x62   : > { %2507 = vst [vmem:[#allocation20_spill] sm:$0xff] %v1776_v38  ;;  %445 = vadd.xlane.f32.xlu1 %v444_v28  ;;  %v489_v50 = vadd.f32 %v488_v16, %v1735_v35  ;;  %v544_v52 = vadd.f32 %v543_v33, %v1762_v7  ;;  %v553_v55 = vmul.f32 %v1766_v19, %v1766_v19  ;;  %v1792_v0 = vunpack.c.h.bf16 %v1114_v36 }
  0x63   : > { %v554_v56 = vmul.f32 %v1768_v25, %v1768_v25  ;;  %v501_v57 = vadd.f32 %v500_v37, %v496_v60  ;;  %v556_v59 = vadd.f32 %v551_v39, %v550_v34  ;;  %2508 = vst [vmem:[#allocation21_spill] sm:$0xff] %v1790_v61  ;;  %v1795_v15 = vunpack.c.l.bf16 %v1115_v44  ;;  %v1118_v34 = vld [vmem:[%s1555_s8 + $0xc0] sm:$0xff] }
  0x64   : > { %2509 = vst [vmem:[#allocation22_spill] sm:$0xff] %v1792_v0  ;;  %490 = vadd.xlane.f32.xlu0 %v489_v50  ;;  %v545_v1 = vadd.f32 %v544_v52, %v1766_v19  ;;  %v1797_v28 = vunpack.c.h.bf16 %v1115_v44  ;;  %v1799_v16 = vunpack.c.l.bf16 %v1116_v45  ;;  %v1801_v2 = vunpack.c.h.bf16 %v1116_v45  ;;  %v1119_v50 = vld [vmem:[%s1555_s8 + $0xc8] sm:$0xff] }
  0x65   : > { %2510 = vst [vmem:[#allocation23_spill] sm:$0xff] %v1795_v15  ;;  %v502_v33 = vadd.f32 %v501_v57, %v497_v8  ;;  %v557_v7 = vadd.f32 %v556_v59, %v552_v40  ;;  %v601_v60 = vadd.f32 %v1792_v0, %v1790_v61  ;;  %v608_v37 = vmul.f32 %v1790_v61, %v1790_v61  ;;  %v1120_v57 = vld [vmem:[%s1555_s8 + $0xd0] sm:$0xff] }
  0x66   : > { %2511 = vst [vmem:[#allocation24_spill] sm:$0xff] %v1797_v28  ;;  %2512 = vst [vmem:[#allocation25_spill] sm:$0xff] %v1799_v16  ;;  %v546_v36 = vadd.f32 %v545_v1, %v1768_v25  ;;  %v609_v39 = vmul.f32 %v1792_v0, %v1792_v0  ;;  %v610_v44 = vmul.f32 %v1795_v15, %v1795_v15  ;;  %v1823_v61 = vunpack.c.l.bf16 %v1118_v34 }
  0x67   : > { %2513 = vst [vmem:[#allocation26_spill] sm:$0xff] %v1801_v2  ;;  %503 = vadd.xlane.f32.xlu1 %v502_v33  ;;  %v555_v8 = vmul.f32 %v1776_v38, %v1776_v38  ;;  %v558_v40 = vadd.f32 %v557_v7, %v553_v55  ;;  %v602_v45 = vadd.f32 %v601_v60, %v1795_v15  ;;  %v1826_v19 = vunpack.c.h.bf16 %v1118_v34 }
  0x68   : > { %v611_v52 = vmul.f32 %v1797_v28, %v1797_v28  ;;  %v547_v59 = vadd.f32 %v546_v36, %v1776_v38  ;;  %v612_v1 = vmul.f32 %v1799_v16, %v1799_v16  ;;  %v614_v0 = vadd.f32 %v609_v39, %v608_v37  ;;  %2514 = vst [vmem:[#allocation27_spill] sm:$0xff] %v1823_v61 }
  0x69   : > { %v559_v33 = vadd.f32 %v558_v40, %v554_v56  ;;  %v603_v25 = vadd.f32 %v602_v45, %v1797_v28  ;;  %2515 = vst [vmem:[#allocation28_spill] sm:$0xff] %v1826_v19  ;;  %v1828_v7 = vunpack.c.l.bf16 %v1119_v50  ;;  %v613_v55 = vmul.f32 %v1801_v2, %v1801_v2  ;;  %v1122_v40 = vld [vmem:[%s1555_s8 + $0xd8] sm:$0xff] }
  0x6a   : > { %548 = vadd.xlane.f32.xlu0 %v547_v59  ;;  %v615_v60 = vadd.f32 %v614_v0, %v610_v44  ;;  %v1832_v36 = vunpack.c.h.bf16 %v1119_v50  ;;  %v1834_v15 = vunpack.c.l.bf16 %v1120_v57  ;;  %v659_v34 = vadd.f32 %v1826_v19, %v1823_v61  ;;  %v1123_v50 = vld [vmem:[%s1555_s8 + $0xe0] sm:$0xff] }
  0x6b   : > { %2516 = vst [vmem:[#allocation29_spill] sm:$0xff] %v1828_v7  ;;  %v560_v37 = vadd.f32 %v559_v33, %v555_v8  ;;  %v604_v56 = vadd.f32 %v603_v25, %v1799_v16  ;;  %v666_v39 = vmul.f32 %v1823_v61, %v1823_v61  ;;  %v1842_v59 = vunpack.c.h.bf16 %v1120_v57  ;;  %v1124_v8 = vld [vmem:[%s1555_s8 + $0xe8] sm:$0xff] }
  0x6c   : > { %2517 = vst [vmem:[#allocation30_spill] sm:$0xff] %v1832_v36  ;;  %2518 = vst [vmem:[#allocation31_spill] sm:$0xff] %v1834_v15  ;;  %v616_v45 = vadd.f32 %v615_v60, %v611_v52  ;;  %v667_v0 = vmul.f32 %v1826_v19, %v1826_v19  ;;  %v668_v44 = vmul.f32 %v1828_v7, %v1828_v7  ;;  %v1856_v19 = vunpack.c.l.bf16 %v1122_v40 }
  0x6d   : > { %2519 = vst [vmem:[#allocation32_spill] sm:$0xff] %v1842_v59  ;;  %561 = vadd.xlane.f32.xlu1 %v560_v37  ;;  %v605_v25 = vadd.f32 %v604_v56, %v1801_v2  ;;  %v660_v33 = vadd.f32 %v659_v34, %v1828_v7  ;;  %v669_v61 = vmul.f32 %v1832_v36, %v1832_v36  ;;  %v1858_v16 = vunpack.c.h.bf16 %v1122_v40 }
  0x6e   : > { %v670_v52 = vmul.f32 %v1834_v15, %v1834_v15  ;;  %v617_v57 = vadd.f32 %v616_v45, %v612_v1  ;;  %v672_v60 = vadd.f32 %v667_v0, %v666_v39  ;;  %2520 = vst [vmem:[#allocation33_spill] sm:$0xff] %v1856_v19  ;;  %v1861_v56 = vunpack.c.l.bf16 %v1123_v50  ;;  %v1126_v39 = vld [vmem:[%s1555_s8 + $0xf0] sm:$0xff] }
  0x6f   : > { %2521 = vst [vmem:[#allocation34_spill] sm:$0xff] %v1858_v16  ;;  %606 = vadd.xlane.f32.xlu0 %v605_v25  ;;  %v661_v37 = vadd.f32 %v660_v33, %v1832_v36  ;;  %v1863_v34 = vunpack.c.h.bf16 %v1123_v50  ;;  %v1865_v7 = vunpack.c.l.bf16 %v1124_v8  ;;  %v1867_v38 = vunpack.c.h.bf16 %v1124_v8  ;;  %v1127_v25 = vld [vmem:[%s1555_s8 + $0xf8] sm:$0xff] }
  0x70   : > { %2522 = vst [vmem:[#allocation35_spill] sm:$0xff] %v1861_v56  ;;  %v618_v2 = vadd.f32 %v617_v57, %v613_v55  ;;  %v673_v28 = vadd.f32 %v672_v60, %v668_v44  ;;  %v717_v1 = vadd.f32 %v1858_v16, %v1856_v19  ;;  %v724_v45 = vmul.f32 %v1856_v19, %v1856_v19  ;;  %v1128_v57 = vld [vmem:[%s1555_s8 + $0x100] sm:$0xff] }
  0x71   : > { %2523 = vst [vmem:[#allocation36_spill] sm:$0xff] %v1863_v34  ;;  %2524 = vst [vmem:[#allocation37_spill] sm:$0xff] %v1865_v7  ;;  %v662_v40 = vadd.f32 %v661_v37, %v1834_v15  ;;  %v725_v0 = vmul.f32 %v1858_v16, %v1858_v16  ;;  %v726_v50 = vmul.f32 %v1861_v56, %v1861_v56  ;;  %v1889_v19 = vunpack.c.l.bf16 %v1126_v39 }
  0x72   : > { %2525 = vst [vmem:[#allocation38_spill] sm:$0xff] %v1867_v38  ;;  %619 = vadd.xlane.f32.xlu1 %v618_v2  ;;  %v671_v55 = vmul.f32 %v1842_v59, %v1842_v59  ;;  %v674_v44 = vadd.f32 %v673_v28, %v669_v61  ;;  %v718_v8 = vadd.f32 %v717_v1, %v1861_v56  ;;  %v1892_v36 = vunpack.c.h.bf16 %v1126_v39 }
  0x73   : > { %v727_v33 = vmul.f32 %v1863_v34, %v1863_v34  ;;  %v663_v60 = vadd.f32 %v662_v40, %v1842_v59  ;;  %v728_v37 = vmul.f32 %v1865_v7, %v1865_v7  ;;  %v730_v16 = vadd.f32 %v725_v0, %v724_v45  ;;  %2526 = vst [vmem:[#allocation39_spill] sm:$0xff] %v1889_v19 }
  0x74   : > { %v675_v2 = vadd.f32 %v674_v44, %v670_v52  ;;  %v719_v15 = vadd.f32 %v718_v8, %v1863_v34  ;;  %2527 = vst [vmem:[#allocation40_spill] sm:$0xff] %v1892_v36  ;;  %v1894_v61 = vunpack.c.l.bf16 %v1127_v25  ;;  %v729_v28 = vmul.f32 %v1867_v38, %v1867_v38  ;;  %v1130_v44 = vld [vmem:[%s1555_s8 + $0x108] sm:$0xff] }
  0x75   : > { %664 = vadd.xlane.f32.xlu0 %v663_v60  ;;  %v731_v1 = vadd.f32 %v730_v16, %v726_v50  ;;  %v1898_v40 = vunpack.c.h.bf16 %v1127_v25  ;;  %v1900_v56 = vunpack.c.l.bf16 %v1128_v57  ;;  %v775_v39 = vadd.f32 %v1892_v36, %v1889_v19  ;;  %v1131_v25 = vld [vmem:[%s1555_s8 + $0x110] sm:$0xff] }
  0x76   : > { %2528 = vst [vmem:[#allocation41_spill] sm:$0xff] %v1894_v61  ;;  %v676_v45 = vadd.f32 %v675_v2, %v671_v55  ;;  %v720_v52 = vadd.f32 %v719_v15, %v1865_v7  ;;  %v782_v0 = vmul.f32 %v1889_v19, %v1889_v19  ;;  %v1908_v60 = vunpack.c.h.bf16 %v1128_v57  ;;  %v1132_v55 = vld [vmem:[%s1555_s8 + $0x118] sm:$0xff] }
  0x77   : > { %2529 = vst [vmem:[#allocation42_spill] sm:$0xff] %v1898_v40  ;;  %2530 = vst [vmem:[#allocation43_spill] sm:$0xff] %v1900_v56  ;;  %v732_v8 = vadd.f32 %v731_v1, %v727_v33  ;;  %v783_v16 = vmul.f32 %v1892_v36, %v1892_v36  ;;  %v784_v50 = vmul.f32 %v1894_v61, %v1894_v61  ;;  %v1922_v36 = vunpack.c.l.bf16 %v1130_v44 }
  0x78   : > { %2531 = vst [vmem:[#allocation44_spill] sm:$0xff] %v1908_v60  ;;  %677 = vadd.xlane.f32.xlu1 %v676_v45  ;;  %v721_v15 = vadd.f32 %v720_v52, %v1867_v38  ;;  %v776_v2 = vadd.f32 %v775_v39, %v1894_v61  ;;  %v785_v19 = vmul.f32 %v1898_v40, %v1898_v40  ;;  %v1924_v7 = vunpack.c.h.bf16 %v1130_v44 }
  0x79   : > { %v786_v33 = vmul.f32 %v1900_v56, %v1900_v56  ;;  %v733_v57 = vadd.f32 %v732_v8, %v728_v37  ;;  %v788_v1 = vadd.f32 %v783_v16, %v782_v0  ;;  %2532 = vst [vmem:[#allocation45_spill] sm:$0xff] %v1922_v36  ;;  %v1927_v52 = vunpack.c.l.bf16 %v1131_v25  ;;  %v1134_v0 = vld [vmem:[%s1555_s8 + $0x120] sm:$0xff] }
  0x7a   : > { %2533 = vst [vmem:[#allocation46_spill] sm:$0xff] %v1924_v7  ;;  %722 = vadd.xlane.f32.xlu0 %v721_v15  ;;  %v777_v45 = vadd.f32 %v776_v2, %v1898_v40  ;;  %v1929_v39 = vunpack.c.h.bf16 %v1131_v25  ;;  %v1931_v61 = vunpack.c.l.bf16 %v1132_v55  ;;  %v1933_v59 = vunpack.c.h.bf16 %v1132_v55 }
  0x7b   : > { %2534 = vst [vmem:[#allocation47_spill] sm:$0xff] %v1927_v52  ;;  %v734_v38 = vadd.f32 %v733_v57, %v729_v28  ;;  %v789_v34 = vadd.f32 %v788_v1, %v784_v50  ;;  %v833_v37 = vadd.f32 %v1924_v7, %v1922_v36  ;;  %v840_v8 = vmul.f32 %v1922_v36, %v1922_v36  ;;  %v1135_v28 = vld [vmem:[%s1555_s8 + $0x128] sm:$0xff] }
  0x7c   : > { %2535 = vst [vmem:[#allocation48_spill] sm:$0xff] %v1929_v39  ;;  %2536 = vst [vmem:[#allocation49_spill] sm:$0xff] %v1931_v61  ;;  %v778_v44 = vadd.f32 %v777_v45, %v1900_v56  ;;  %v841_v16 = vmul.f32 %v1924_v7, %v1924_v7  ;;  %v842_v25 = vmul.f32 %v1927_v52, %v1927_v52  ;;  %v1952_v45 = vunpack.c.l.bf16 %v1134_v0  ;;  %v1136_v56 = vld [vmem:[%s1555_s8 + $0x130] sm:$0xff] }
  0x7d   : > { %2537 = vst [vmem:[#allocation50_spill] sm:$0xff] %v1933_v59  ;;  %735 = vadd.xlane.f32.xlu1 %v734_v38  ;;  %v787_v50 = vmul.f32 %v1908_v60, %v1908_v60  ;;  %v790_v55 = vadd.f32 %v789_v34, %v785_v19  ;;  %v834_v15 = vadd.f32 %v833_v37, %v1927_v52  ;;  %v1956_v40 = vunpack.c.h.bf16 %v1134_v0 }
  0x7e   : > { %v779_v2 = vadd.f32 %v778_v44, %v1908_v60  ;;  %v843_v57 = vmul.f32 %v1929_v39, %v1929_v39  ;;  %v846_v1 = vadd.f32 %v841_v16, %v840_v8  ;;  %2538 = vst [vmem:[#allocation51_spill] sm:$0xff] %v1952_v45  ;;  %v1958_v38 = vunpack.c.l.bf16 %v1135_v28 }
  0x7f   : > { %v791_v7 = vadd.f32 %v790_v55, %v786_v33  ;;  %v835_v36 = vadd.f32 %v834_v15, %v1929_v39  ;;  %2539 = vst [vmem:[#allocation52_spill] sm:$0xff] %v1956_v40  ;;  %v844_v19 = vmul.f32 %v1931_v61, %v1931_v61  ;;  %v845_v34 = vmul.f32 %v1933_v59, %v1933_v59 }
  0x80   : > { %2540 = vst [vmem:[#allocation53_spill] sm:$0xff] %v1958_v38  ;;  %780 = vadd.xlane.f32.xlu0 %v779_v2  ;;  %v847_v37 = vadd.f32 %v846_v1, %v842_v25  ;;  %v1964_v44 = vunpack.c.h.bf16 %v1135_v28  ;;  %v891_v16 = vadd.f32 %v1956_v40, %v1952_v45  ;;  %v898_v0 = vmul.f32 %v1952_v45, %v1952_v45 }
  0x81   : > { %v792_v8 = vadd.f32 %v791_v7, %v787_v50  ;;  %v836_v33 = vadd.f32 %v835_v36, %v1931_v61  ;;  %v1971_v15 = vunpack.c.l.bf16 %v1136_v56  ;;  %v899_v2 = vmul.f32 %v1956_v40, %v1956_v40 }
  0x82   : > { %2541 = vst [vmem:[#allocation54_spill] sm:$0xff] %v1964_v44  ;;  %v848_v55 = vadd.f32 %v847_v37, %v843_v57  ;;  %v900_v25 = vmul.f32 %v1958_v38, %v1958_v38  ;;  %v892_v36 = vadd.f32 %v891_v16, %v1958_v38  ;;  %v1979_v50 = vunpack.c.h.bf16 %v1136_v56 }
  0x83   : > { %2542 = vst [vmem:[#allocation55_spill] sm:$0xff] %v1971_v15  ;;  %793 = vadd.xlane.f32.xlu1 %v792_v8  ;;  %v837_v7 = vadd.f32 %v836_v33, %v1933_v59  ;;  %v901_v1 = vmul.f32 %v1964_v44, %v1964_v44  ;;  %v904_v57 = vadd.f32 %v899_v2, %v898_v0 }
  0x84   : > { %v849_v28 = vadd.f32 %v848_v55, %v844_v19  ;;  %2543 = vst [vmem:[#allocation56_spill] sm:$0xff] %v1979_v50  ;;  %v893_v37 = vadd.f32 %v892_v36, %v1964_v44  ;;  %v902_v40 = vmul.f32 %v1971_v15, %v1971_v15  ;;  %v903_v19 = vmul.f32 %v1979_v50, %v1979_v50 }
  0x85   : > { %838 = vadd.xlane.f32.xlu0 %v837_v7  ;;  %v905_v61 = vadd.f32 %v904_v57, %v900_v25 }
  0x86   : > { %v850_v45 = vadd.f32 %v849_v28, %v845_v34  ;;  %v894_v8 = vadd.f32 %v893_v37, %v1971_v15 }
  0x87   : > { %v906_v56 = vadd.f32 %v905_v61, %v901_v1 }
  0x88   : > { %851 = vadd.xlane.f32.xlu1 %v850_v45  ;;  %v895_v33 = vadd.f32 %v894_v8, %v1979_v50 }
  0x89   : > { %v907_v16 = vadd.f32 %v906_v56, %v902_v40 }
  0x8a   : > { %896 = vadd.xlane.f32.xlu0 %v895_v33  ;;  %v229_v33 = vstv %s1990_s9  ;;  %s2380_s9 = scalar_lea.hbm %s2429_s2, %s1141_s13 }
  0x8b   : > { %v908_v0 = vadd.f32 %v907_v16, %v903_v19 }
  0x8d   : > { %909 = vadd.xlane.f32.xlu1 %v908_v0 }
  0xd4   : > { %v207_v34 = vpop.xlane.xlu0 %206 }
  0xd5   : > { %v1998_v45 = vmul.f32 0.0013020834, %v207_v34 }
  0xd6   : > { %v220_v61 = vpop.xlane.xlu1 %219 }
  0xd7   : > { %v222_v40 = vmul.f32 0.0013020834, %v220_v61  ;;  %v223_v55 = vmul.f32 %v1998_v45, %v1998_v45 }
  0xd8   : > { %v259_v2 = vpop.xlane.xlu0 %258 }
  0xd9   : > { %v2010_v25 = vmul.f32 0.0013020834, %v259_v2  ;;  %v224_v7 = vsub.f32 %v222_v40, %v223_v55 }
  0xda   : > { %v272_v36 = vpop.xlane.xlu1 %271 }
  0xdb   : > { %v225_v28 = vmax.f32 %v224_v7, 0.0  ;;  %v274_v1 = vmul.f32 0.0013020834, %v272_v36  ;;  %v275_v57 = vmul.f32 %v2010_v25, %v2010_v25  ;;  %v232_v36 = vsub.f32 %v1566_v4, %v1998_v45 }
  0xdc   : > { %v317_v37 = vpop.xlane.xlu0 %316  ;;  %v283_v4 = vsub.f32 %v1579_v12, %v2010_v25  ;;  %v288_v12 = vsub.f32 %v1612_v32, %v2010_v25 }
  0xdd   : > { %v227_v8 = vadd.f32 1e-05, %v225_v28  ;;  %v2024_v19 = vmul.f32 0.0013020834, %v317_v37  ;;  %v276_v56 = vsub.f32 %v274_v1, %v275_v57 }
  0xdf   : > { %1246 = vrsqrt.f32 %v227_v8  ;;  %v277_v34 = vmax.f32 %v276_v56, 0.0  ;;  %v333_v2 = vmul.f32 %v2024_v19, %v2024_v19 }
  0xe0   : > { %v330_v16 = vpop.xlane.xlu1 %329 }
  0xe1   : > { %v332_v55 = vmul.f32 0.0013020834, %v330_v16  ;;  %v279_v1 = vadd.f32 1e-05, %v277_v34  ;;  %v231_v16 = vsub.f32 %v1564_v3, %v1998_v45  ;;  %v233_v34 = vsub.f32 %v1568_v5, %v1998_v45 }
  0xe2   : > { %v375_v7 = vpop.xlane.xlu0 %374  ;;  %v236_v3 = vsub.f32 %v1576_v10, %v1998_v45  ;;  %v284_v5 = vsub.f32 %v1581_v13, %v2010_v25  ;;  %v2544_v13 = vstv %s1992_s16  ;;  %s967_s16 = scalar_lea.sflag [#allocation4], %s1551_s14 }
  0xe3   : > { %v2034_v57 = vmul.f32 0.0013020834, %v375_v7  ;;  %v334_v50 = vsub.f32 %v332_v55, %v333_v2  ;;  %1248 = vrsqrt.f32 %v279_v1  ;;  %v234_v7 = vsub.f32 %v1570_v6, %v1998_v45 }
  0xe4   : > { %v235_v2 = vsub.f32 %v1574_v9, %v1998_v45  ;;  %v285_v6 = vsub.f32 %v1595_v20, %v2010_v25  ;;  %v286_v9 = vsub.f32 %v1598_v23, %v2010_v25 }
  0xe5   : > { %v388_v40 = vpop.xlane.xlu1 %387  ;;  %v335_v55 = vmax.f32 %v334_v50, 0.0  ;;  %v391_v44 = vmul.f32 %v2034_v57, %v2034_v57 }
  0xe6   : > { %v390_v1 = vmul.f32 0.0013020834, %v388_v40 }
  0xe7   : > { %v337_v50 = vadd.f32 1e-05, %v335_v55  ;;  %v433_v61 = vpop.xlane.xlu0 %432 }
  0xe8   : > { %v392_v45 = vsub.f32 %v390_v1, %v391_v44  ;;  %v2067_v40 = vmul.f32 0.0013020834, %v433_v61 }
  0xe9   : > { %1250 = vrsqrt.f32 %v337_v50 }
  0xea   : > { %v393_v61 = vmax.f32 %v392_v45, 0.0  ;;  %v449_v45 = vmul.f32 %v2067_v40, %v2067_v40 }
  0xeb   : > { %v446_v1 = vpop.xlane.xlu1 %445 }
  0xec   : > { %v448_v15 = vmul.f32 0.0013020834, %v446_v1  ;;  %v1247_v0 = vpop.eup %1246  ;;  %v395_v28 = vadd.f32 1e-05, %v393_v61 }
  0xed   : > { %v491_v44 = vpop.xlane.xlu0 %490  ;;  %v230_v32 = vmul.f32 %v1247_v0, %v229_v33  ;;  %v2547_v33 = vstv %s1994_s20  ;;  %s1311_s20 = scalar_lea.vmem %s984_s4, 384 }
  0xee   : > { %v2097_v1 = vmul.f32 0.0013020834, %v491_v44  ;;  %1252 = vrsqrt.f32 %v395_v28  ;;  %v450_v37 = vsub.f32 %v448_v15, %v449_v45  ;;  %p1312_p3 = scmp.ne.s32.totalorder %s984_s4, %s1311_s20 }
  0xef   : > { %v237_v56 = vmul.f32 %v231_v16, %v230_v32  ;;  %v238_v8 = vmul.f32 %v232_v36, %v230_v32  ;;  %v239_v23 = vmul.f32 %v233_v34, %v230_v32  ;;  %v240_v20 = vmul.f32 %v234_v7, %v230_v32 }
  0xf0   : > { %v504_v44 = vpop.xlane.xlu1 %503  ;;  %v451_v55 = vmax.f32 %v450_v37, 0.0  ;;  %v1249_v61 = vpop.eup %1248  ;;  %v241_v15 = vmul.f32 %v235_v2, %v230_v32  ;;  %v242_v45 = vmul.f32 %v236_v3, %v230_v32  ;;  %v507_v16 = vmul.f32 %v2097_v1, %v2097_v1  ;;  %p1313_p7 = pnand %p1312_p3, %p1492_p8 }
  0xf1   : > { %v282_v0 = vmul.f32 %v1249_v61, %v2544_v13  ;;  %v506_v38 = vmul.f32 0.0013020834, %v504_v44  ;;  %v2545_v36 = vsub.f32 %v1600_v24, %v2010_v25  ;;  %v2553_v24 = vld [vmem:[#allocation22_spill] sm:$0xff] }
  0xf2   : > { %v453_v10 = vadd.f32 1e-05, %v451_v55  ;;  %p1314_p12 = pneg %p1313_p7 }
  0xf3   : > { %v549_v28 = vpop.xlane.xlu0 %548  ;;  %v289_v7 = vmul.f32 %v283_v4, %v282_v0  ;;  %v290_v2 = vmul.f32 %v284_v5, %v282_v0  ;;  %v291_v55 = vmul.f32 %v285_v6, %v282_v0  ;;  %v292_v32 = vmul.f32 %v286_v9, %v282_v0  ;;  %v2546_v5 = vld [vmem:[#allocation16_spill] sm:$0xff]  ;;  %v2548_v6 = vld [vmem:[#allocation17_spill] sm:$0xff] }
  0xf4   : > { %v2123_v34 = vmul.f32 0.0013020834, %v549_v28  ;;  %1254 = vrsqrt.f32 %v453_v10  ;;  %v508_v61 = vsub.f32 %v506_v38, %v507_v16  ;;  %v293_v50 = vmul.f32 %v2545_v36, %v282_v0  ;;  %v2552_v10 = vld [vmem:[#allocation21_spill] sm:$0xff] }
  0xf5   : > { %v294_v28 = vmul.f32 %v288_v12, %v282_v0  ;;  %v296_v9 = vadd.f32 %v290_v2, %v238_v8  ;;  %v297_v60 = vadd.f32 %v291_v55, %v239_v23  ;;  %v298_v25 = vadd.f32 %v292_v32, %v240_v20 }
  0xf6   : > { %v562_v44 = vpop.xlane.xlu1 %561  ;;  %v1251_v37 = vpop.eup %1250  ;;  %v509_v13 = vmax.f32 %v508_v61, 0.0  ;;  %v565_v0 = vmul.f32 %v2123_v34, %v2123_v34  ;;  %v295_v61 = vadd.f32 %v289_v7, %v237_v56  ;;  %v2557_v20 = vstv %s1996_s21  ;;  %s1418_s21 = smov [#allocation7]  }
  0xf7   : > { %v340_v59 = vmul.f32 %v1251_v37, %v2547_v33  ;;  %v564_v12 = vmul.f32 0.0013020834, %v562_v44  ;;  %v2551_v33 = vld [vmem:[#allocation20_spill] sm:$0xff]  ;;  %v2559_v38 = vsub.f32 %v1624_v42, %v2024_v19  ;;  %v2562_v8 = vsub.f32 %v1629_v46, %v2024_v19 }
  0xf8   : > { %v607_v16 = vpop.xlane.xlu0 %606  ;;  %v511_v3 = vadd.f32 1e-05, %v509_v13  ;;  %v2554_v13 = vld [vmem:[#allocation23_spill] sm:$0xff]  ;;  %v300_v37 = vadd.f32 %v294_v28, %v242_v45  ;;  %v2563_v32 = vsub.f32 %v1631_v47, %v2024_v19  ;;  %v2564_v42 = vsub.f32 %v1636_v51, %v2024_v19 }
  0xf9   : > { %v2146_v36 = vmul.f32 0.0013020834, %v607_v16  ;;  %v566_v4 = vsub.f32 %v564_v12, %v565_v0  ;;  %v347_v16 = vmul.f32 %v2559_v38, %v340_v59  ;;  %v2565_v46 = vsub.f32 %v1644_v58, %v2024_v19 }
  0xfa   : > { %1256 = vrsqrt.f32 %v511_v3  ;;  %v350_v3 = vmul.f32 %v2563_v32, %v340_v59  ;;  %v351_v38 = vmul.f32 %v2564_v42, %v340_v59  ;;  %v2568_v42 = vstv %s2000_s24  ;;  %s1315_s24 = sshll.u32 %s1418_s21, 4  ;;  %s1316_s24 = int_to_ptr.vmem [resolvable:$false] %s1315_s24 }
  0xfb   : > { %v620_v52 = vpop.xlane.xlu1 %619  ;;  %v1253_v44 = vpop.eup %1252  ;;  %v567_v7 = vmax.f32 %v566_v4, 0.0  ;;  %v623_v23 = vmul.f32 %v2146_v36, %v2146_v36  ;;  %v2560_v4 = vsub.f32 %v1626_v43, %v2024_v19  ;;  %v353_v45 = vadd.f32 %v347_v16, %v295_v61  ;;  %p1318_p1 = scmp.lt.s32.totalorder %s984_s4, %s1316_s24 }
  0xfc   : > { %v622_v12 = vmul.f32 0.0013020834, %v620_v52  ;;  %v398_v55 = vmul.f32 %v1253_v44, %v2557_v20  ;;  %v349_v44 = vmul.f32 %v2562_v8, %v340_v59  ;;  %v299_v20 = vadd.f32 %v293_v50, %v241_v15 }
  0xfd   : > { %v348_v56 = vmul.f32 %v2560_v4, %v340_v59  ;;  %v569_v39 = vadd.f32 1e-05, %v567_v7  ;;  %v352_v50 = vmul.f32 %v2565_v46, %v340_v59  ;;  %v356_v51 = vadd.f32 %v350_v3, %v298_v25 }
  0xfe   : > { %v665_v0 = vpop.xlane.xlu0 %664  ;;  %v624_v2 = vsub.f32 %v622_v12, %v623_v23  ;;  %v355_v47 = vadd.f32 %v349_v44, %v297_v60  ;;  %v2569_v60 = vsub.f32 %v1663_v17, %v2034_v57  ;;  %v2570_v25 = vsub.f32 %v1665_v18, %v2034_v57 }
  0xff   : > { %v2172_v52 = vmul.f32 0.0013020834, %v665_v0  ;;  %1258 = vrsqrt.f32 %v569_v39  ;;  %v354_v28 = vadd.f32 %v348_v56, %v296_v9  ;;  %v2566_v39 = vsub.f32 %v1658_v11, %v2034_v57 }
 0x100   : > { %v625_v43 = vmax.f32 %v624_v2, 0.0  ;;  %v2567_v0 = vsub.f32 %v1660_v14, %v2034_v57  ;;  %v407_v19 = vmul.f32 %v2569_v60, %v398_v55  ;;  %v357_v9 = vadd.f32 %v351_v38, %v299_v20 }
 0x101   : > { %2561 = vst [vmem:[#allocation16_spill] sm:$0xff] %v2172_v52  ;;  %v678_v7 = vpop.xlane.xlu1 %677  ;;  %v681_v12 = vmul.f32 %v2172_v52, %v2172_v52  ;;  %v1255_v8 = vpop.eup %1254  ;;  %v405_v2 = vmul.f32 %v2566_v39, %v398_v55  ;;  %v408_v11 = vmul.f32 %v2570_v25, %v398_v55  ;;  %v2571_v61 = vsub.f32 %v1667_v21, %v2034_v57 }
 0x102   : > { %v680_v15 = vmul.f32 0.0013020834, %v678_v7  ;;  %v627_v23 = vadd.f32 1e-05, %v625_v43  ;;  %v406_v4 = vmul.f32 %v2567_v0, %v398_v55  ;;  %v456_v52 = vmul.f32 %v1255_v8, %v2568_v42 }
 0x103   : > { %v723_v32 = vpop.xlane.xlu0 %722  ;;  %v409_v14 = vmul.f32 %v2571_v61, %v398_v55  ;;  %v358_v44 = vadd.f32 %v352_v50, %v300_v37  ;;  %v2572_v17 = vsub.f32 %v1669_v22, %v2034_v57  ;;  %v411_v38 = vadd.f32 %v405_v2, %v353_v45 }
 0x104   : > { %v682_v58 = vsub.f32 %v680_v15, %v681_v12  ;;  %v2196_v59 = vmul.f32 0.0013020834, %v723_v32  ;;  %1260 = vrsqrt.f32 %v627_v23  ;;  %v412_v7 = vadd.f32 %v406_v4, %v354_v28 }
 0x105   : > { %v410_v43 = vmul.f32 %v2572_v17, %v398_v55  ;;  %v413_v18 = vadd.f32 %v407_v19, %v355_v47  ;;  %v414_v46 = vadd.f32 %v408_v11, %v356_v51  ;;  %v2573_v21 = vsub.f32 %v1691_v41, %v2067_v40 }
 0x106   : > { %v683_v16 = vmax.f32 %v682_v58, 0.0  ;;  %v736_v56 = vpop.xlane.xlu1 %735  ;;  %v739_v3 = vmul.f32 %v2196_v59, %v2196_v59  ;;  %v2574_v8 = vsub.f32 %v1694_v48, %v2067_v40  ;;  %v415_v22 = vadd.f32 %v409_v14, %v357_v9 }
 0x107   : > { %v738_v20 = vmul.f32 0.0013020834, %v736_v56  ;;  %v463_v15 = vmul.f32 %v2573_v21, %v456_v52  ;;  %v1257_v37 = vpop.eup %1256  ;;  %v2575_v57 = vsub.f32 %v1696_v49, %v2067_v40  ;;  %v2576_v45 = vsub.f32 %v1700_v53, %v2067_v40 }
 0x108   : > { %v685_v12 = vadd.f32 1e-05, %v683_v16  ;;  %v464_v23 = vmul.f32 %v2574_v8, %v456_v52  ;;  %v2577_v47 = vstv %s2002_s25  ;;  %v2578_v48 = vsub.f32 %v1702_v54, %v2067_v40  ;;  %s1317_s25 = scalar_lea.vmem %s1316_s24, 768 }
 0x109   : > { %v740_v50 = vsub.f32 %v738_v20, %v739_v3  ;;  %v781_v32 = vpop.xlane.xlu0 %780  ;;  %v465_v55 = vmul.f32 %v2575_v57, %v456_v52  ;;  %v466_v28 = vmul.f32 %v2576_v45, %v456_v52  ;;  %v514_v51 = vmul.f32 %v1257_v37, %v2577_v47  ;;  %p1319_p10 = scmp.lt.s32.totalorder %s1317_s25, %s1311_s20 }
 0x10a   : > { %1262 = vrsqrt.f32 %v685_v12  ;;  %v2226_v41 = vmul.f32 0.0013020834, %v781_v32  ;;  %v467_v39 = vmul.f32 %v2578_v48, %v456_v52  ;;  %v416_v0 = vadd.f32 %v410_v43, %v358_v44  ;;  %v2591_v48 = vld [vmem:[#allocation18_spill] sm:$0xff] }
 0x10b   : > { %v741_v2 = vmax.f32 %v740_v50, 0.0  ;;  %v2579_v4 = vsub.f32 %v1710_v62, %v2067_v40  ;;  %v469_v42 = vadd.f32 %v463_v15, %v411_v38  ;;  %v470_v60 = vadd.f32 %v464_v23, %v412_v7  ;;  %p1320_p11 = por %p1319_p10, %p1318_p1 }
 0x10c   : > { %v794_v58 = vpop.xlane.xlu1 %793  ;;  %v797_v53 = vmul.f32 %v2226_v41, %v2226_v41  ;;  %v471_v19 = vadd.f32 %v465_v55, %v413_v18  ;;  %v472_v9 = vadd.f32 %v466_v28, %v414_v46  ;;  %v2580_v54 = vsub.f32 %v1724_v26, %v2097_v1  ;;  %v1259_v40 = vpop.eup %1258 }
 0x10d   : > { %v468_v49 = vmul.f32 %v2579_v4, %v456_v52  ;;  %v743_v25 = vadd.f32 1e-05, %v741_v2  ;;  %v796_v11 = vmul.f32 0.0013020834, %v794_v58  ;;  %v2581_v14 = vsub.f32 %v1726_v27, %v2097_v1  ;;  %p1321_p13 = pnand %p1320_p11, %p1314_p12 }
 0x10e   : > { %v521_v61 = vmul.f32 %v2580_v54, %v514_v51  ;;  %v839_v52 = vpop.xlane.xlu0 %838  ;;  %v473_v16 = vadd.f32 %v467_v39, %v415_v22  ;;  %v2582_v56 = vsub.f32 %v1729_v29, %v2097_v1  ;;  %v2583_v44 = vsub.f32 %v1731_v30, %v2097_v1 }
 0x10f   : > { %v522_v62 = vmul.f32 %v2581_v14, %v514_v51  ;;  %v2584_v43 = vsub.f32 %v1733_v31, %v2097_v1  ;;  %v2585_v20 = vstv %s2004_s17  ;;  %1264 = vrsqrt.f32 %v743_v25 }
 0x110   : > { %v523_v3 = vmul.f32 %v2582_v56, %v514_v51  ;;  %v524_v17 = vmul.f32 %v2583_v44, %v514_v51  ;;  %v572_v38 = vmul.f32 %v1259_v40, %v2585_v20  ;;  %v798_v27 = vsub.f32 %v796_v11, %v797_v53  ;;  %v2599_v56 = vld [vmem:[#allocation24_spill] sm:$0xff] }
 0x111   : > { %v525_v26 = vmul.f32 %v2584_v43, %v514_v51  ;;  %v2253_v7 = vmul.f32 0.0013020834, %v839_v52  ;;  %v474_v18 = vadd.f32 %v468_v49, %v416_v0  ;;  %v2586_v29 = vsub.f32 %v1735_v35, %v2097_v1  ;;  %v852_v15 = vpop.xlane.xlu1 %851  ;;  %v1261_v37 = vpop.eup %1260  ;;  %v2593_v49 = vld [vmem:[#allocation19_spill] sm:$0xff] }
 0x112   : > { %v527_v46 = vadd.f32 %v521_v61, %v469_v42  ;;  %v528_v21 = vadd.f32 %v522_v62, %v470_v60  ;;  %v799_v30 = vmax.f32 %v798_v27, 0.0  ;;  %v529_v8 = vadd.f32 %v523_v3, %v471_v19  ;;  %v2602_v27 = vld [vmem:[#allocation25_spill] sm:$0xff] }
 0x113   : > { %v526_v12 = vmul.f32 %v2586_v29, %v514_v51  ;;  %v855_v31 = vmul.f32 %v2253_v7, %v2253_v7  ;;  %v530_v23 = vadd.f32 %v524_v17, %v472_v9  ;;  %v854_v50 = vmul.f32 0.0013020834, %v852_v15  ;;  %v897_v4 = vpop.xlane.xlu0 %896 }
 0x114   : > { %v2587_v32 = vsub.f32 %v1757_v63, %v2123_v34  ;;  %v2588_v57 = vsub.f32 %v2546_v5, %v2123_v34  ;;  %v2589_v1 = vsub.f32 %v2548_v6, %v2123_v34  ;;  %v2590_v45 = vstv %s2008_s18 }
 0x115   : > { %v630_v28 = vmul.f32 %v1261_v37, %v2590_v45  ;;  %v801_v47 = vadd.f32 1e-05, %v799_v30  ;;  %v531_v51 = vadd.f32 %v525_v26, %v473_v16  ;;  %v2592_v39 = vsub.f32 %v2591_v48, %v2123_v34  ;;  %v2611_v45 = vld [vmem:[#allocation31_spill] sm:$0xff] }
 0x116   : > { %v579_v22 = vmul.f32 %v2587_v32, %v572_v38  ;;  %v580_v35 = vmul.f32 %v2588_v57, %v572_v38  ;;  %v581_v55 = vmul.f32 %v2589_v1, %v572_v38  ;;  %v856_v0 = vsub.f32 %v854_v50, %v855_v31  ;;  %v910_v62 = vpop.xlane.xlu1 %909  ;;  %v2608_v50 = vld [vmem:[#allocation28_spill] sm:$0xff] }
 0x117   : > { %v582_v2 = vmul.f32 %v2592_v39, %v572_v38  ;;  %v532_v63 = vadd.f32 %v526_v12, %v474_v18  ;;  %v2594_v42 = vsub.f32 %v2593_v49, %v2123_v34  ;;  %v2595_v58 = vsub.f32 %v2551_v33, %v2123_v34  ;;  %v1263_v14 = vpop.eup %1262 }
 0x118   : > { %1266 = vrsqrt.f32 %v801_v47  ;;  %v2280_v53 = vmul.f32 0.0013020834, %v897_v4  ;;  %v585_v60 = vadd.f32 %v579_v22, %v527_v46  ;;  %v586_v19 = vadd.f32 %v580_v35, %v528_v21  ;;  %v2609_v22 = vld [vmem:[#allocation29_spill] sm:$0xff]  ;;  %v2612_v47 = vld [vmem:[#allocation32_spill] sm:$0xff] }
 0x119   : > { %v583_v5 = vmul.f32 %v2594_v42, %v572_v38  ;;  %v584_v6 = vmul.f32 %v2595_v58, %v572_v38  ;;  %v857_v9 = vmax.f32 %v856_v0, 0.0  ;;  %v587_v25 = vadd.f32 %v581_v55, %v529_v8  ;;  %v2606_v8 = vld [vmem:[#allocation16_spill] sm:$0xff] }
 0x11a   : > { %v588_v11 = vadd.f32 %v582_v2, %v530_v23  ;;  %v2596_v54 = vsub.f32 %v2552_v10, %v2146_v36  ;;  %v913_v40 = vmul.f32 %v2280_v53, %v2280_v53  ;;  %v2597_v34 = vsub.f32 %v2553_v24, %v2146_v36  ;;  %v2604_v24 = vld [vmem:[#allocation26_spill] sm:$0xff]  ;;  %v2607_v23 = vld [vmem:[#allocation27_spill] sm:$0xff] }
 0x11b   : > { %v2598_v52 = vsub.f32 %v2554_v13, %v2146_v36  ;;  %v2600_v3 = vsub.f32 %v2599_v56, %v2146_v36  ;;  %v859_v17 = vadd.f32 1e-05, %v857_v9  ;;  %v912_v10 = vmul.f32 0.0013020834, %v910_v62 }
 0x11c   : > { %v637_v61 = vmul.f32 %v2596_v54, %v630_v28  ;;  %v638_v33 = vmul.f32 %v2597_v34, %v630_v28  ;;  %v589_v43 = vadd.f32 %v583_v5, %v531_v51  ;;  %v590_v26 = vadd.f32 %v584_v6, %v532_v63  ;;  %v1265_v35 = vpop.eup %1264 }
 0x11d   : > { %v639_v16 = vmul.f32 %v2598_v52, %v630_v28  ;;  %v640_v44 = vmul.f32 %v2600_v3, %v630_v28  ;;  %v2601_v20 = vstv %s2012_s28  ;;  %v2603_v18 = vsub.f32 %v2602_v27, %v2146_v36  ;;  %v2618_v3 = vld [vmem:[#allocation37_spill] sm:$0xff] }
 0x11e   : > { %v688_v38 = vmul.f32 %v1263_v14, %v2601_v20  ;;  %v2605_v12 = vsub.f32 %v2604_v24, %v2146_v36  ;;  %v643_v46 = vadd.f32 %v637_v61, %v585_v60  ;;  %1268 = vrsqrt.f32 %v859_v17  ;;  %v2610_v36 = vld [vmem:[#allocation30_spill] sm:$0xff] }
 0x11f   : > { %v641_v29 = vmul.f32 %v2603_v18, %v630_v28  ;;  %v914_v21 = vsub.f32 %v912_v10, %v913_v40  ;;  %v644_v30 = vadd.f32 %v638_v33, %v586_v19  ;;  %v645_v15 = vadd.f32 %v639_v16, %v587_v25  ;;  %v2615_v14 = vld [vmem:[#allocation34_spill] sm:$0xff]  ;;  %v2616_v40 = vld [vmem:[#allocation35_spill] sm:$0xff]  ;;  %v2617_v33 = vld [vmem:[#allocation36_spill] sm:$0xff] }
 0x120   : > { %v642_v13 = vmul.f32 %v2605_v12, %v630_v28  ;;  %v646_v31 = vadd.f32 %v640_v44, %v588_v11  ;;  %v689_v37 = vsub.f32 %v2607_v23, %v2606_v8  ;;  %v690_v32 = vsub.f32 %v2608_v50, %v2606_v8  ;;  %v2614_v11 = vld [vmem:[#allocation33_spill] sm:$0xff]  ;;  %v2619_v17 = vld [vmem:[#allocation38_spill] sm:$0xff]  ;;  %v2621_v12 = vld [vmem:[#allocation39_spill] sm:$0xff] }
 0x121   : > { %v691_v57 = vsub.f32 %v2609_v22, %v2606_v8  ;;  %v915_v1 = vmax.f32 %v914_v21, 0.0  ;;  %v692_v55 = vsub.f32 %v2610_v36, %v2606_v8  ;;  %v693_v28 = vsub.f32 %v2611_v45, %v2606_v8 }
 0x122   : > { %v694_v51 = vsub.f32 %v2612_v47, %v2606_v8  ;;  %v2613_v48 = vstv %s2014_s29  ;;  %v695_v2 = vmul.f32 %v689_v37, %v688_v38  ;;  %v696_v0 = vmul.f32 %v690_v32, %v688_v38  ;;  %v2624_v8 = vld [vmem:[#allocation42_spill] sm:$0xff]  ;;  %v2625_v32 = vld [vmem:[#allocation43_spill] sm:$0xff] }
 0x123   : > { %v746_v39 = vmul.f32 %v1265_v35, %v2613_v48  ;;  %v697_v4 = vmul.f32 %v691_v57, %v688_v38  ;;  %v917_v63 = vadd.f32 1e-05, %v915_v1  ;;  %v698_v49 = vmul.f32 %v692_v55, %v688_v38  ;;  %v2626_v57 = vld [vmem:[#allocation44_spill] sm:$0xff] }
 0x124   : > { %v699_v42 = vmul.f32 %v693_v28, %v688_v38  ;;  %v700_v5 = vmul.f32 %v694_v51, %v688_v38  ;;  %v647_v58 = vadd.f32 %v641_v29, %v589_v43  ;;  %v648_v6 = vadd.f32 %v642_v13, %v590_v26 }
 0x125   : > { %v701_v60 = vadd.f32 %v695_v2, %v643_v46  ;;  %v702_v19 = vadd.f32 %v696_v0, %v644_v30  ;;  %1270 = vrsqrt.f32 %v917_v63  ;;  %v703_v9 = vadd.f32 %v697_v4, %v645_v15  ;;  %v1267_v16 = vpop.eup %1266  ;;  %v2622_v46 = vld [vmem:[#allocation40_spill] sm:$0xff] }
 0x126   : > { %v704_v25 = vadd.f32 %v698_v49, %v646_v31  ;;  %v747_v54 = vsub.f32 %v2614_v11, %v2196_v59  ;;  %v705_v61 = vadd.f32 %v699_v42, %v647_v58  ;;  %v748_v62 = vsub.f32 %v2615_v14, %v2196_v59  ;;  %v2623_v31 = vld [vmem:[#allocation41_spill] sm:$0xff]  ;;  %v2629_v58 = vld [vmem:[#allocation46_spill] sm:$0xff] }
 0x127   : > { %v749_v34 = vsub.f32 %v2616_v40, %v2196_v59  ;;  %v750_v52 = vsub.f32 %v2617_v33, %v2196_v59  ;;  %v706_v56 = vadd.f32 %v700_v5, %v648_v6  ;;  %v751_v44 = vsub.f32 %v2618_v3, %v2196_v59  ;;  %v2628_v49 = vld [vmem:[#allocation45_spill] sm:$0xff] }
 0x128   : > { %v752_v10 = vsub.f32 %v2619_v17, %v2196_v59  ;;  %v753_v43 = vmul.f32 %v747_v54, %v746_v39  ;;  %v2620_v26 = vstv %s2016_s30  ;;  %v754_v38 = vmul.f32 %v748_v62, %v746_v39  ;;  %v2632_v11 = vld [vmem:[#allocation49_spill] sm:$0xff]  ;;  %v2634_v17 = vld [vmem:[#allocation51_spill] sm:$0xff] }
 0x129   : > { %v804_v20 = vmul.f32 %v1267_v16, %v2620_v26  ;;  %v755_v27 = vmul.f32 %v749_v34, %v746_v39  ;;  %v756_v18 = vmul.f32 %v750_v52, %v746_v39  ;;  %v757_v29 = vmul.f32 %v751_v44, %v746_v39 }
 0x12a   : > { %v758_v24 = vmul.f32 %v752_v10, %v746_v39  ;;  %v805_v13 = vsub.f32 %v2621_v12, %v2226_v41  ;;  %v806_v21 = vsub.f32 %v2622_v46, %v2226_v41  ;;  %v759_v30 = vadd.f32 %v753_v43, %v701_v60  ;;  %v2630_v60 = vld [vmem:[#allocation47_spill] sm:$0xff] }
 0x12b   : > { %v760_v15 = vadd.f32 %v754_v38, %v702_v19  ;;  %v807_v59 = vsub.f32 %v2623_v31, %v2226_v41  ;;  %v808_v23 = vsub.f32 %v2624_v8, %v2226_v41  ;;  %v761_v37 = vadd.f32 %v755_v27, %v703_v9  ;;  %v1269_v1 = vpop.eup %1268  ;;  %v2631_v9 = vld [vmem:[#allocation48_spill] sm:$0xff] }
 0x12c   : > { %v762_v50 = vadd.f32 %v756_v18, %v704_v25  ;;  %v809_v22 = vsub.f32 %v2625_v32, %v2226_v41  ;;  %v810_v35 = vsub.f32 %v2626_v57, %v2226_v41  ;;  %v811_v36 = vmul.f32 %v805_v13, %v804_v20  ;;  %v2638_v13 = vld [vmem:[#allocation54_spill] sm:$0xff] }
 0x12d   : > { %v812_v55 = vmul.f32 %v806_v21, %v804_v20  ;;  %v813_v45 = vmul.f32 %v807_v59, %v804_v20  ;;  %v814_v28 = vmul.f32 %v808_v23, %v804_v20  ;;  %v2627_v47 = vstv %s2018_s3  ;;  %v2639_v21 = vld [vmem:[#allocation55_spill] sm:$0xff] }
 0x12e   : > { %v862_v51 = vmul.f32 %v1269_v1, %v2627_v47  ;;  %v763_v48 = vadd.f32 %v757_v29, %v705_v61  ;;  %v815_v39 = vmul.f32 %v809_v22, %v804_v20  ;;  %v816_v2 = vmul.f32 %v810_v35, %v804_v20  ;;  %v2633_v61 = vld [vmem:[#allocation50_spill] sm:$0xff] }
 0x12f   : > { %v764_v0 = vadd.f32 %v758_v24, %v706_v56  ;;  %v817_v4 = vadd.f32 %v811_v36, %v759_v30  ;;  %v818_v63 = vadd.f32 %v812_v55, %v760_v15  ;;  %v863_v42 = vsub.f32 %v2628_v49, %v2253_v7  ;;  %v2637_v24 = vld [vmem:[#allocation53_spill] sm:$0xff]  ;;  %v2640_v15 = vld [vmem:[#allocation56_spill] sm:$0xff] }
 0x130   : > { %v819_v41 = vadd.f32 %v813_v45, %v761_v37  ;;  %v820_v5 = vadd.f32 %v814_v28, %v762_v50  ;;  %v864_v6 = vsub.f32 %v2629_v58, %v2253_v7  ;;  %v865_v19 = vsub.f32 %v2630_v60, %v2253_v7 }
 0x131   : > { %v866_v25 = vsub.f32 %v2631_v9, %v2253_v7  ;;  %v867_v54 = vsub.f32 %v2632_v11, %v2253_v7  ;;  %v868_v14 = vsub.f32 %v2633_v61, %v2253_v7  ;;  %v869_v62 = vmul.f32 %v863_v42, %v862_v51  ;;  %v2636_v7 = vld [vmem:[#allocation52_spill] sm:$0xff] }
 0x132   : > { %v821_v40 = vadd.f32 %v815_v39, %v763_v48  ;;  %v822_v34 = vadd.f32 %v816_v2, %v764_v0  ;;  %v870_v33 = vmul.f32 %v864_v6, %v862_v51  ;;  %v871_v52 = vmul.f32 %v865_v19, %v862_v51  ;;  %v1271_v16 = vpop.eup %1270 }
 0x133   : > { %v872_v56 = vmul.f32 %v866_v25, %v862_v51  ;;  %v873_v3 = vmul.f32 %v867_v54, %v862_v51  ;;  %v874_v44 = vmul.f32 %v868_v14, %v862_v51  ;;  %v921_v10 = vsub.f32 %v2634_v17, %v2280_v53 }
 0x134   : > { %v2635_v43 = vstv %s2022_s5  ;;  %v875_v20 = vadd.f32 %v869_v62, %v817_v4  ;;  %v876_v38 = vadd.f32 %v870_v33, %v818_v63  ;;  %v922_v27 = vsub.f32 %v2636_v7, %v2280_v53 }
 0x135   : > { %v920_v26 = vmul.f32 %v1271_v16, %v2635_v43  ;;  %v877_v18 = vadd.f32 %v871_v52, %v819_v41  ;;  %v878_v29 = vadd.f32 %v872_v56, %v820_v5  ;;  %v923_v12 = vsub.f32 %v2637_v24, %v2280_v53 }
 0x136   : > { %v924_v46 = vsub.f32 %v2638_v13, %v2280_v53  ;;  %v925_v30 = vsub.f32 %v2639_v21, %v2280_v53  ;;  %v926_v31 = vsub.f32 %v2640_v15, %v2280_v53  ;;  %v879_v23 = vadd.f32 %v873_v3, %v821_v40 }
 0x137   : > { %v927_v59 = vmul.f32 %v921_v10, %v920_v26  ;;  %v928_v8 = vmul.f32 %v922_v27, %v920_v26  ;;  %v880_v37 = vadd.f32 %v874_v44, %v822_v34  ;;  %v929_v50 = vmul.f32 %v923_v12, %v920_v26 }
 0x138   : > { %v930_v32 = vmul.f32 %v924_v46, %v920_v26  ;;  %v931_v22 = vmul.f32 %v925_v30, %v920_v26  ;;  %v932_v57 = vmul.f32 %v926_v31, %v920_v26 }
 0x139   : > { %v933_v35 = vadd.f32 %v927_v59, %v875_v20  ;;  %v934_v1 = vadd.f32 %v928_v8, %v876_v38  ;;  %v935_v36 = vadd.f32 %v929_v50, %v877_v18 }
 0x13a   : > { %v936_v55 = vadd.f32 %v930_v32, %v878_v29  ;;  %v937_v53 = vadd.f32 %v931_v22, %v879_v23  ;;  %v938_v45 = vadd.f32 %v932_v57, %v880_v37 }
 0x13b   : > { %v1144_v28 = vpack.c.bf16 %v934_v1, %v933_v35 }
 0x13c   : > { %v1145_v47 = vpack.c.bf16 %v936_v55, %v935_v36  ;;  %v1146_v51 = vpack.c.bf16 %v938_v45, %v937_v53 }
 0x13d   : > { %963 = vst [vmem:[%s191_s26] sm:$0xff] %v1144_v28 }
 0x13e   : > { %964 = vst [vmem:[%s191_s26 + $0x8] sm:$0xff] %v1145_v47  ;;  %965 = vst [vmem:[%s191_s26 + $0x10] sm:$0xff] %v1146_v51 }
 0x13f   : > { %1324 = shalt.err (!%p1321_p13)
}
 0x140   : > { %s1325_s17 = scalar_lea.hbm %s2380_s9, 384  ;;  %s1329_s28 = scalar_lea.hbm %s2429_s2, 1536 }
 0x141   : > { %p1326_p0 = scmp.ne.s32.totalorder %s2380_s9, %s1325_s17  ;;  %p1330_p5 = scmp.lt.s32.totalorder %s2380_s9, %s2429_s2 }
 0x142   : > { %p1331_p6 = scmp.lt.s32.totalorder %s1329_s28, %s1325_s17 }
 0x143   : > { %p1327_p2 = pnand %p1326_p0, %p1492_p8 }
 0x144   : > { %p1332_p3 = por %p1331_p6, %p1330_p5 }
 0x145   : > { %p1328_p4 = pneg %p1327_p2 }
 0x147   : > { %p1333_p7 = pnand %p1332_p3, %p1328_p4 }
 0x149   : > { %1336 = shalt.err (!%p1333_p7)
}
 0x14a   : > { %1160 = dma.vmem_to_hbm [thread:$0]  (%p1492_p8), %s984_s4, 384, %s2380_s9, %s967_s16  }
 0x14b PF: > { %s2641_s3 = sld [smem:[#allocation13_spill]] }
 0x14c   : > { %s2642_s5 = sld [smem:[#allocation11_spill]] }
 0x151   : > { %p1177_p12 = scmp.ge.s32.totalorder %s2641_s3, 2 }
 0x152   : > { %s995_s19 = sand.u32 1, %s2642_s5  }
 0x153   : > { %p1171_p1 = pnand %p1177_p12, %p1496_p9  ;;  %s996_s23 = scalar_lea.sflag [#allocation4], %s995_s19 }
 0x155   : > { %p1172_p10 = pneg %p1171_p1 }
 0x157   : > { %1378 = dma.done.wait (%p1172_p10), %s996_s23, 384  }
 0x158   : > { %1380 = vsyncadd (%p1172_p10), %s996_s23, 4294966912  ;;  %s19_s16 = sadd.s32 1, %s2641_s3   ;;  %s2644_s12 = sld [smem:[#allocation12_spill]] }
 0x159   : > { %p16_p11 = scmp.ge.s32.totalorder %s19_s16, 6   ;;  %s2645_s14 = sld [smem:[#allocation15_spill]] }
 0x15a   : > { %s2646_s9 = smov %s1387_s10  ;;  %s2647_s10 = smov %s1391_s11 }
 0x15b   : > { %s2648_s11 = smov %s1535_s0  ;;  %s2649_s13 = smov %s1407_s15 }
 0x15c   : > { %s2650_s15 = smov %s2656_s27  ;;  %18 = sbr.rel (!%p16_p11) target bundleno = 10 (0xa), region = 90 }
 0x161   :  { %1001 = vsyncpa [#allocation3], 1 }
 0x162   :  { %1003 = vsyncpa [#allocation3 + $0x1], 1 }
 0x163   :  { %1004 = vsyncpa [#allocation4], 1 }
 0x164   :  { %1006 = vsyncpa [#allocation4 + $0x1], 1 }
 0x165   :  { %1007 = vsyncpa [#allocation5], 1 }
 0x166   :  { %1009 = vsyncpa [#allocation5 + $0x1], 1 }

</bundles_post_ra>
